<compile_context>
chip_gen: v7x
topology: tpu7x:2x2x1
jax: 0.10.0
libtpu: 0.0.40
codegen_flags: <defaults>
</compile_context>

<pallas_src>
import functools

import numpy as np
import jax
import jax.numpy as jnp
from jax.experimental import pallas as pl
from jax.experimental.pallas import tpu as pltpu


def _round_up(x, m):
    return ((x + m - 1) // m) * m


def _choose_tiles(n, tm, tk):
    # Row tile: multiple of 8; prefer >=2 row tiles so the "parallel" grid
    # axis can be sharded across both v7x TensorCores.
    tm = max(8, min(tm, _round_up(n, 8)))
    tm = _round_up(tm, 8)
    while tm > 128 and -(-n // tm) < 2:
        tm //= 2
    tm = _round_up(tm, 8)
    # Reduction (column) tile: multiple of 128 (lane dim of the A block).
    tk = max(128, min(tk, _round_up(n, 128)))
    tk = _round_up(tk, 128)
    return tm, tk


def precompute_graph(adj, *, tm=512, tk=512):
    """Per-graph precompute, hoisted out of the per-layer forward:
    padded adjacency, degree vector, and a compacted block-sparse schedule."""
    adj_np = np.asarray(jax.device_get(adj), dtype=np.float32)
    n = adj_np.shape[0]
    assert adj_np.shape == (n, n)
    tm, tk = _choose_tiles(n, tm, tk)
    n_pm, n_pk = _round_up(n, tm), _round_up(n, tk)

    deg = adj_np.sum(axis=1, keepdims=True)            # rowsum(A), exact bias
    adj_p = np.zeros((n_pm, n_pk), np.float32)
    adj_p[:n, :n] = adj_np
    deg_p = np.zeros((n_pm, 1), np.float32)
    deg_p[:n] = deg

    nbi, nbk = n_pm // tm, n_pk // tk
    blk_nz = adj_p.reshape(nbi, tm, nbk, tk).any(axis=(1, 3))   # (nbi, nbk)
    cnt = blk_nz.sum(axis=1).astype(np.int32)
    kmax = max(int(cnt.max()), 1)
    colidx = np.zeros((nbi, kmax), np.int32)
    for i in range(nbi):
        nz = np.flatnonzero(blk_nz[i]).astype(np.int32)
        colidx[i, :nz.size] = nz
        # Carry-forward padding: repeating the last block index lets Pallas
        # elide the DMA on the masked-off trailing steps of this block-row.
        colidx[i, nz.size:] = nz[-1] if nz.size else 0

    return dict(
        n=n, tm=tm, tk=tk, n_pm=n_pm, n_pk=n_pk, kmax=kmax,
        nnz_blocks=int(blk_nz.sum()),
        adj=jnp.asarray(adj_p),
        deg=jnp.asarray(deg_p),
        colidx=jnp.asarray(colidx.reshape(-1)),   # 1-D int32: cheap SMEM layout
        cnt=jnp.asarray(cnt),
    )


# ---------------------------------------------------------------------------
# Fused kernel:  out = (A @ x) @ W + deg * b
# Grid: (row tiles [parallel], nonzero adjacency blocks per row [arbitrary]).
# ---------------------------------------------------------------------------
def _gcn_fused_kernel(colidx_ref, cnt_ref, a_ref, x_ref, deg_ref, w_ref,
                      b_ref, o_ref, agg_ref, *, kmax, tk, x_resident,
                      compute_dtype):
    i = pl.program_id(0)
    k = pl.program_id(1)

    @pl.when(k == 0)
    def _init():
        agg_ref[...] = jnp.zeros_like(agg_ref)

    # Only the first cnt[i] schedule slots of this block-row are real blocks.
    @pl.when(k < cnt_ref[i])
    def _accum():
        if x_resident:
            c = colidx_ref[i * kmax + k]
            start = pl.multiple_of(c * tk, tk)
            x_tile = x_ref[pl.ds(start, tk), :]
        else:
            x_tile = x_ref[...]
        agg_ref[...] += jnp.dot(a_ref[...].astype(compute_dtype),
                                x_tile.astype(compute_dtype),
                                preferred_element_type=jnp.float32)

    @pl.when(k == pl.num_programs(1) - 1)
    def _finalize():
        proj = jnp.dot(agg_ref[...], w_ref[...],
                       preferred_element_type=jnp.float32)
        # deg * b reproduces A @ broadcast(b) exactly (no row-norm assumption).
        o_ref[...] = (proj + deg_ref[...] * b_ref[...]).astype(o_ref.dtype)


def gcn_layer_forward(inputs, w_t, b, graph, *, compute_dtype=jnp.float32):
    """inputs: (N, Fin) f32; w_t: (Fin, Fout) (pre-transposed nn.Linear weight);
    b: (1, Fout); graph: dict from precompute_graph.  Returns (N, Fout) f32."""
    n, fin = inputs.shape
    fout = w_t.shape[1]
    assert graph["n"] == n
    tm, tk = graph["tm"], graph["tk"]
    n_pm, n_pk, kmax = graph["n_pm"], graph["n_pk"], graph["kmax"]
    nbi = n_pm // tm

    # Pad Fin to a lane-dense multiple of 128 (zero x cols / zero W rows: exact).
    fin_p = _round_up(max(fin, 1), 128)
    x_p = jnp.zeros((n_pk, fin_p), inputs.dtype).at[:n, :fin].set(inputs)
    w_p = jnp.zeros((fin_p, fout), w_t.dtype).at[:fin, :].set(w_t)
    b2 = b.reshape(1, fout)

    x_bytes = n_pk * fin_p * 4
    x_resident = x_bytes <= 8 * 1024 * 1024
    if x_resident:
        # Constant block index: x fetched into VMEM exactly once.
        x_spec = pl.BlockSpec((n_pk, fin_p), lambda i, k, ci, ct: (0, 0))
    else:
        x_spec = pl.BlockSpec((tk, fin_p),
                              lambda i, k, ci, ct: (ci[i * kmax + k], 0))

    nnz = graph["nnz_blocks"]
    flops = 2 * nnz * tm * tk * fin_p + 2 * n_pm * fin_p * fout + n_pm * fout
    bytes_accessed = 4 * (nnz * tm * tk + n_pk * fin_p + fin_p * fout
                          + fout + n_pm + n_pm * fout)

    vmem_bytes = (2 * tm * tk * 4                                    # A dbuf
                  + (x_bytes if x_resident else 2 * tk * fin_p * 4)  # x
                  + 2 * fin_p * fout * 4 + 2 * fout * 4 + 2 * tm * 4
                  + 2 * tm * fout * 4                                # out dbuf
                  + tm * fin_p * 4)                                  # agg
    vmem_limit = int(min(max(2 * vmem_bytes, 32 * 1024 * 1024),
                         60 * 1024 * 1024))

    kernel = functools.partial(_gcn_fused_kernel, kmax=kmax, tk=tk,
                               x_resident=x_resident,
                               compute_dtype=compute_dtype)

    out_p = pl.pallas_call(
        kernel,
        out_shape=jax.ShapeDtypeStruct((n_pm, fout), jnp.float32),
        grid_spec=pltpu.PrefetchScalarGridSpec(
            num_scalar_prefetch=2,
            grid=(nbi, kmax),
            in_specs=[
                # A tile: block column chosen by the compacted schedule, so
                # all-zero adjacency blocks are never DMA'd at all.
                pl.BlockSpec((tm, tk),
                             lambda i, k, ci, ct: (i, ci[i * kmax + k])),
                x_spec,
                pl.BlockSpec((tm, 1), lambda i, k, ci, ct: (i, 0)),       # deg
                pl.BlockSpec((fin_p, fout), lambda i, k, ci, ct: (0, 0)),  # W
                pl.BlockSpec((1, fout), lambda i, k, ci, ct: (0, 0)),     # bias
            ],
            out_specs=pl.BlockSpec((tm, fout), lambda i, k, ci, ct: (i, 0)),
            scratch_shapes=[pltpu.VMEM((tm, fin_p), jnp.float32)],  # A@x acc
        ),
        compiler_params=pltpu.CompilerParams(
            dimension_semantics=("parallel", "arbitrary"),
            vmem_limit_bytes=vmem_limit),
        cost_estimate=pl.CostEstimate(
            flops=flops, transcendentals=0, bytes_accessed=bytes_accessed),
    )(graph["colidx"], graph["cnt"], graph["adj"], x_p, graph["deg"], w_p, b2)

    return out_p[:n]


def gcn_layer_reference(inputs, w_t, b, adj):
    # Original PyTorch ordering: linear then aggregate.
    return adj @ (inputs @ w_t + b)


if __name__ == "__main__":
    num_nodes = 512
    in_feats = 64
    out_feats = 128

    key = jax.random.PRNGKey(0)
    k_x, k_w, k_b = jax.random.split(key, 3)

    x = jax.random.normal(k_x, (num_nodes, in_feats), dtype=jnp.float32)

    # Deterministic nn.Linear-style init: U(-1/sqrt(in), 1/sqrt(in)).
    bound = 1.0 / float(np.sqrt(in_feats))
    w = jax.random.uniform(k_w, (out_feats, in_feats), jnp.float32, -bound, bound)
    b = jax.random.uniform(k_b, (1, out_feats), jnp.float32, -bound, bound)
    w_t = w.T  # (in_feats, out_feats)

    # Deterministic sparse graph: ring + self loops, row-normalized adjacency.
    idx = jnp.arange(num_nodes)
    eye = jnp.eye(num_nodes, dtype=jnp.float32)
    adj = eye + eye[(idx + 1) % num_nodes] + eye[(idx - 1) % num_nodes]
    adj = adj / jnp.sum(adj, axis=1, keepdims=True)

    ref = gcn_layer_reference(x, w_t, b, adj)

    # Default (large-tile) plan, plus a small-tile plan that exercises the
    # block-sparse DMA-skipping schedule (4 block-cols, only 3 nonzero/row).
    for tiles in ((512, 512), (128, 128)):
        graph = precompute_graph(adj, tm=tiles[0], tk=tiles[1])
        out = jax.block_until_ready(gcn_layer_forward(x, w_t, b, graph))
        assert out.shape == (num_nodes, out_feats)
        max_err = float(jnp.max(jnp.abs(out - ref)))
        assert jnp.allclose(out, ref, atol=1e-4, rtol=1e-4), max_err

    print("KERNEL_OK")
</pallas_src>

<mosaic_0001>
module attributes {stable_mosaic.version = 11 : i64} {
  func.func @_gcn_fused_kernel(%arg0: i32, %arg1: i32, %arg2: memref<2xi32, #tpu.memory_space<smem>>, %arg3: memref<2xi32, #tpu.memory_space<smem>>, %arg4: memref<256x512xf32, #tpu.memory_space<vmem>>, %arg5: memref<512x128xf32, #tpu.memory_space<vmem>>, %arg6: memref<256x1xf32, #tpu.memory_space<vmem>>, %arg7: memref<128x128xf32, #tpu.memory_space<vmem>>, %arg8: memref<1x128xf32, #tpu.memory_space<vmem>>, %arg9: memref<256x128xf32, #tpu.memory_space<vmem>>, %arg10: memref<256x128xf32, #tpu.memory_space<vmem>>) attributes {dimension_semantics = [#tpu.dimension_semantics<parallel>, #tpu.dimension_semantics<arbitrary>], iteration_bounds = array<i64: 2, 1>, scalar_prefetch = 2 : i64, scratch_operands = 1 : i64, tpu.core_type = #tpu.core_type<tc>, window_params = [{transform_indices = @transform_0, window_bounds = array<i64: 256, 512>}, {pipeline_mode = #tpu.pipeline_mode<synchronous>, transform_indices = @transform_1, window_bounds = array<i64: 512, 128>}, {transform_indices = @transform_2, window_bounds = array<i64: 256, 1>}, {pipeline_mode = #tpu.pipeline_mode<synchronous>, transform_indices = @transform_3, window_bounds = array<i64: 128, 128>}, {pipeline_mode = #tpu.pipeline_mode<synchronous>, transform_indices = @transform_4, window_bounds = array<i64: 1, 128>}, {transform_indices = @transform_5, window_bounds = array<i64: 256, 128>}]} {
    %c0_i32 = arith.constant 0 : i32
    %0 = arith.cmpi eq, %arg1, %c0_i32 : i32
    %1 = arith.extui %0 : i1 to i32
    %c0_i32_0 = arith.constant 0 : i32
    %2 = arith.cmpi ne, %1, %c0_i32_0 : i32
    scf.if %2 {
      %cst = arith.constant 0.000000e+00 : f32
      %11 = vector.broadcast %cst : f32 to vector<256x128xf32>
      %c0 = arith.constant 0 : index
      %c0_4 = arith.constant 0 : index
      %12 = vector.load %arg10[%c0, %c0_4] : memref<256x128xf32, #tpu.memory_space<vmem>>, vector<256x128xf32>
      tpu.vector_store %arg10[%c0, %c0_4], %11 {strides = array<i32>} : memref<256x128xf32, #tpu.memory_space<vmem>>, vector<256x128xf32>,
    } else {
    }
    %3 = arith.index_cast %arg0 : i32 to index
    %4 = memref.load %arg3[%3] : memref<2xi32, #tpu.memory_space<smem>>
    %5 = arith.cmpi slt, %arg1, %4 : i32
    %6 = arith.extui %5 : i1 to i32
    %c0_i32_1 = arith.constant 0 : i32
    %7 = arith.cmpi ne, %6, %c0_i32_1 : i32
    scf.if %7 {
      %c1_i32 = arith.constant 1 : i32
      %11 = arith.muli %arg0, %c1_i32 : i32
      %12 = arith.addi %11, %arg1 : i32
      %13 = arith.index_cast %12 : i32 to index
      %14 = memref.load %arg2[%13] : memref<2xi32, #tpu.memory_space<smem>>
      %c512_i32 = arith.constant 512 : i32
      %15 = arith.muli %14, %c512_i32 : i32
      %16 = tpu.assume_multiple %15, 512 : i32
      %17 = arith.index_cast %16 : i32 to index
      %c0 = arith.constant 0 : index
      %18 = vector.load %arg5[%17, %c0] : memref<512x128xf32, #tpu.memory_space<vmem>>, vector<512x128xf32>
      %c0_4 = arith.constant 0 : index
      %c0_5 = arith.constant 0 : index
      %19 = vector.load %arg10[%c0_4, %c0_5] : memref<256x128xf32, #tpu.memory_space<vmem>>, vector<256x128xf32>
      %c0_6 = arith.constant 0 : index
      %c0_7 = arith.constant 0 : index
      %20 = vector.load %arg4[%c0_6, %c0_7] : memref<256x512xf32, #tpu.memory_space<vmem>>, vector<256x512xf32>
      %cst = arith.constant dense<0.000000e+00> : vector<256x128xf32>
      %21 = tpu.matmul %20, %18, %cst {dimension_numbers = #tpu.dot_dimension_numbers<[1], [0], [0], [1], [0, 0, 1, 1], [], []>} : vector<256x512xf32>, vector<512x128xf32>, vector<256x128xf32> -> vector<256x128xf32>
      %22 = arith.addf %19, %21 : vector<256x128xf32>
      %c0_8 = arith.constant 0 : index
      %c0_9 = arith.constant 0 : index
      %23 = vector.load %arg10[%c0_8, %c0_9] : memref<256x128xf32, #tpu.memory_space<vmem>>, vector<256x128xf32>
      tpu.vector_store %arg10[%c0_8, %c0_9], %22 {strides = array<i32>} : memref<256x128xf32, #tpu.memory_space<vmem>>, vector<256x128xf32>,
    } else {
    }
    %c0_i32_2 = arith.constant 0 : i32
    %8 = arith.cmpi eq, %arg1, %c0_i32_2 : i32
    %9 = arith.extui %8 : i1 to i32
    %c0_i32_3 = arith.constant 0 : i32
    %10 = arith.cmpi ne, %9, %c0_i32_3 : i32
    scf.if %10 {
      %c0 = arith.constant 0 : index
      %c0_4 = arith.constant 0 : index
      %11 = vector.load %arg10[%c0, %c0_4] : memref<256x128xf32, #tpu.memory_space<vmem>>, vector<256x128xf32>
      %c0_5 = arith.constant 0 : index
      %c0_6 = arith.constant 0 : index
      %12 = vector.load %arg7[%c0_5, %c0_6] : memref<128x128xf32, #tpu.memory_space<vmem>>, vector<128x128xf32>
      %cst = arith.constant dense<0.000000e+00> : vector<256x128xf32>
      %13 = tpu.matmul %11, %12, %cst {dimension_numbers = #tpu.dot_dimension_numbers<[1], [0], [0], [1], [0, 0, 1, 1], [], []>} : vector<256x128xf32>, vector<128x128xf32>, vector<256x128xf32> -> vector<256x128xf32>
      %c0_7 = arith.constant 0 : index
      %c0_8 = arith.constant 0 : index
      %14 = vector.load %arg6[%c0_7, %c0_8] : memref<256x1xf32, #tpu.memory_space<vmem>>, vector<256x1xf32>
      %c0_9 = arith.constant 0 : index
      %c0_10 = arith.constant 0 : index
      %15 = vector.load %arg8[%c0_9, %c0_10] : memref<1x128xf32, #tpu.memory_space<vmem>>, vector<1x128xf32>
      %16 = vector.broadcast %14 : vector<256x1xf32> to vector<256x128xf32>
      %17 = vector.broadcast %15 : vector<1x128xf32> to vector<256x128xf32>
      %18 = arith.mulf %16, %17 : vector<256x128xf32>
      %19 = arith.addf %13, %18 : vector<256x128xf32>
      %c0_11 = arith.constant 0 : index
      %c0_12 = arith.constant 0 : index
      %20 = vector.load %arg9[%c0_11, %c0_12] : memref<256x128xf32, #tpu.memory_space<vmem>>, vector<256x128xf32>
      tpu.vector_store %arg9[%c0_11, %c0_12], %19 {strides = array<i32>} : memref<256x128xf32, #tpu.memory_space<vmem>>, vector<256x128xf32>,
    } else {
    }
    return
  }
  func.func @transform_0(%arg0: i32, %arg1: i32, %arg2: memref<2xi32, #tpu.memory_space<smem>>, %arg3: memref<2xi32, #tpu.memory_space<smem>>) -> (i32, i32) {
    %c1_i32 = arith.constant 1 : i32
    %0 = arith.muli %arg0, %c1_i32 : i32
    %1 = arith.addi %0, %arg1 : i32
    %2 = arith.index_cast %1 : i32 to index
    %3 = memref.load %arg2[%2] : memref<2xi32, #tpu.memory_space<smem>>
    %c0_i32 = arith.constant 0 : i32
    return %arg0, %3 : i32, i32
  }
  func.func @transform_1(%arg0: i32, %arg1: i32, %arg2: memref<2xi32, #tpu.memory_space<smem>>, %arg3: memref<2xi32, #tpu.memory_space<smem>>) -> (i32, i32) {
    %c0_i32 = arith.constant 0 : i32
    %c0_i32_0 = arith.constant 0 : i32
    %c0_i32_1 = arith.constant 0 : i32
    return %c0_i32, %c0_i32_0 : i32, i32
  }
  func.func @transform_2(%arg0: i32, %arg1: i32, %arg2: memref<2xi32, #tpu.memory_space<smem>>, %arg3: memref<2xi32, #tpu.memory_space<smem>>) -> (i32, i32) {
    %c0_i32 = arith.constant 0 : i32
    %c0_i32_0 = arith.constant 0 : i32
    return %arg0, %c0_i32 : i32, i32
  }
  func.func @transform_3(%arg0: i32, %arg1: i32, %arg2: memref<2xi32, #tpu.memory_space<smem>>, %arg3: memref<2xi32, #tpu.memory_space<smem>>) -> (i32, i32) {
    %c0_i32 = arith.constant 0 : i32
    %c0_i32_0 = arith.constant 0 : i32
    %c0_i32_1 = arith.constant 0 : i32
    return %c0_i32, %c0_i32_0 : i32, i32
  }
  func.func @transform_4(%arg0: i32, %arg1: i32, %arg2: memref<2xi32, #tpu.memory_space<smem>>, %arg3: memref<2xi32, #tpu.memory_space<smem>>) -> (i32, i32) {
    %c0_i32 = arith.constant 0 : i32
    %c0_i32_0 = arith.constant 0 : i32
    %c0_i32_1 = arith.constant 0 : i32
    return %c0_i32, %c0_i32_0 : i32, i32
  }
  func.func @transform_5(%arg0: i32, %arg1: i32, %arg2: memref<2xi32, #tpu.memory_space<smem>>, %arg3: memref<2xi32, #tpu.memory_space<smem>>) -> (i32, i32) {
    %c0_i32 = arith.constant 0 : i32
    %c0_i32_0 = arith.constant 0 : i32
    return %arg0, %c0_i32 : i32, i32
  }
}

</mosaic_0001>

<bundles_post_ra>
// kernel: tpu_custom_call.1
= control target key start
LH: loop header
LB: loop body
LE: loop exit
PB: predicated region body
PF: predicated region fallthrough
CT: control target
= control target key end

     0   :  { %s3072_s0 = inlined_call_operand.vmem [shape: s32[2], index: 0, kind: input, shape index: {}]   ;;  %s3073_s2 = inlined_call_operand.hbm [shape: f32[512,512], index: 2, kind: input, shape index: {}]   ;;  %s3074_s3 = inlined_call_operand.vmem [shape: f32[512,128], index: 3, kind: input, shape index: {}]   ;;  %s3075_s4 = inlined_call_operand.vmem [shape: f32[512,1], index: 4, kind: input, shape index: {}]   ;;  %s3076_s5 = inlined_call_operand.hbm [shape: f32[128,128], index: 5, kind: input, shape index: {}]   ;;  %s3077_s6 = inlined_call_operand.vmem [shape: f32[1,128], index: 6, kind: input, shape index: {}]   ;;  %s3078_s7 = inlined_call_operand.hbm [shape: f32[512,128], index: 7, kind: output, shape index: {}]   ;;  %s3079_s1 = inlined_call_operand.vmem [shape: s32[2], index: 1, kind: input, shape index: {}]  }
   0x1   :  { %3091 = sst [smem:[#allocation24_spill]] %s3076_s5  ;;  %s12_s26 = sshll.u32 %s3072_s0, 4  ;;  %s13_s26 = int_to_ptr.vmem [resolvable:$true] %s12_s26 }
   0x2   :  { %s16_s29 = sshll.u32 %s3079_s1, 4  ;;  %s2177_s30 = scalar_lea.vmem %s13_s26, 16  ;;  %s17_s29 = int_to_ptr.vmem [resolvable:$true] %s16_s29 }
   0x3   :  { %p2178_p0 = scmp.ne.s32.totalorder %s13_s26, %s2177_s30  ;;  %p2182_p1 = scmp.lt.s32.totalorder %s13_s26, %s13_s26 }
   0x4   :  { %p2183_p2 = scmp.lt.s32.totalorder %s2177_s30, %s2177_s30 }
   0x6   :  { %p2184_p3 = por %p2183_p2, %p2182_p1 }
   0x8   :  { %p2185_p4 = pnand %p2184_p3, %p2178_p0 }
   0xa   :  { %2188 = shalt.err (!%p2185_p4)  }
   0xb   :  { %s2373_s8 = smov [#allocation4]   ;;  %s2189_s9 = scalar_lea.vmem %s17_s29, 16 }
   0xc   :  { %15 = dma.vmem_to_smem %s13_s26, 16, %s2373_s8, [#allocation3] }
   0xd   :  { %p2190_p5 = scmp.ne.s32.totalorder %s17_s29, %s2189_s9  ;;  %p2194_p6 = scmp.lt.s32.totalorder %s17_s29, %s17_s29 }
   0xe   :  { %p2195_p7 = scmp.lt.s32.totalorder %s2189_s9, %s2189_s9 }
  0x10   :  { %p2196_p8 = por %p2195_p7, %p2194_p6 }
  0x12   :  { %p2197_p9 = pnand %p2196_p8, %p2190_p5 }
  0x14   :  { %2200 = shalt.err (!%p2197_p9)  }
  0x15   :  { %s2374_s0 = smov [#allocation5]  }
  0x16   :  { %19 = dma.vmem_to_smem %s17_s29, 16, %s2374_s0, [#allocation3] }
  0x17   :  { %2323 = dma.done.wait [#allocation3], 32 }
  0x18   :  { %2324 = vsyncadd [#allocation3], 4294967264 }
  0x19   :  { %21 = sfence }
  0x1a   :  { %22 = vsyncpa [#allocation7], 0 }
  0x1b   :  { %24 = vsyncpa [#allocation7 + $0x1], 0 }
  0x1c   :  { %25 = vsyncpa [#allocation10], 0 }
  0x1d   :  { %26 = vsyncpa [#allocation8], 0 }
  0x1e   :  { %28 = vsyncpa [#allocation8 + $0x1], 0  ;;  %s2433_s1 = smov 0   ;;  %s2435_s10 = smov 0  }
  0x1f   :  { %s2437_s11 = smov 0   ;;  %s2439_s12 = smov 0  }
  0x20   :  { %s2441_s13 = smov 0   ;;  %s2443_s14 = smov 0  }
  0x21   :  { %s2445_s15 = smov 0   ;;  %s2447_s16 = smov 0  }
  0x22   :  { %s2449_s17 = smov 0  }
  0x23 LB: > { %3092 = sst [smem:[#allocation18_spill]] %s2339_s1  ;;  %s1764_s18 = sadd.s32 4294967295, %s2371_s17   ;;  %s2371_s17 = sphi %s2449_s17, %s34_s17   ;;  %s2367_s16 = sphi %s2447_s16, %s3125_s16   ;;  %s2363_s15 = sphi %s2445_s15, %s3124_s15   ;;  %s2359_s14 = sphi %s2443_s14, %s3123_s14   ;;  %s2355_s13 = sphi %s2441_s13, %s3122_s13   ;;  %s2351_s12 = sphi %s2439_s12, %s3121_s12   ;;  %s2347_s11 = sphi %s2437_s11, %s3117_s11   ;;  %s2343_s10 = sphi %s2435_s10, %s3120_s10   ;;  %s2339_s1 = sphi %s2433_s1, %s3119_s1  }
  0x24   : > { %3093 = sst [smem:[#allocation19_spill]] %s2347_s11  ;;  %s1765_s19 = sadd.s32 4294967294, %s2371_s17  }
  0x25   : > { %3094 = sst [smem:[#allocation20_spill]] %s2371_s17  ;;  %p72_p10 = scmp.ne.s32.totalorder %s2355_s13, %s2351_s12 }
  0x26   : > { %p2479_p11 = scmp.eq.s32.totalorder %s1764_s18, 0  ;;  %p184_p12 = scmp.ne.s32.totalorder %s2347_s11, %s2343_s10 }
  0x27   : > { %p185_p0 = scmp.eq.s32.totalorder %s1764_s18, 1  ;;  %p190_p1 = scmp.ne.s32.totalorder %s2343_s10, %s2339_s1 }
  0x28   : > { %s3095_s20 = scalar_select %p2479_p11, 1, 0 }
  0x29   : > { %p2487_p13 = por %p2479_p11, %p72_p10  ;;  %p191_p2 = scmp.eq.s32.totalorder %s1765_s19, 1 }
  0x2a   : > { %p2493_p3 = por %p185_p0, %p184_p12  ;;  %p1766_p4 = scmp.ge.s32.totalorder %s2371_s17, 1 }
  0x2b   : > { %s3096_s21 = scalar_select %p2487_p13, 1, 0 }
  0x2c   : > { %s3097_s22 = scalar_select %p2493_p3, 1, 0 }
  0x2d   : > { %p2498_p5 = por %p191_p2, %p190_p1  ;;  %p198_p6 = scmp.lt.s32.totalorder %s2371_s17, 3 }
  0x2e   : > { %s2375_s25 = smov [#allocation9]   ;;  %s46_s28 = sadd.s32 1, %s2367_s16 }
  0x2f   : > { %s3098_s23 = scalar_select %p2498_p5, 1, 0 }
  0x30   : > { %p2503_p7 = pnand %p1766_p4, %p198_p6  ;;  %s213_s26 = sshll.u32 %s2375_s25, 4  ;;  %s214_s26 = int_to_ptr.vmem [resolvable:$true] %s213_s26 }
  0x31   : > { %3099 = sst [smem:[#allocation21_spill]] %s3098_s23  ;;  %s3102_s5 = sld [smem:[#allocation24_spill]] }
  0x32   : > { %s3100_s24 = scalar_select %p2503_p7, 1, 0 }
  0x33   : > { %p2073_p8 = pneg %p2503_p7 }
  0x35   : > { %p2512_p10 = pnand %p2073_p8, %p2479_p11 }
  0x37   : > { %s2201_s8 = scalar_lea.hbm %s3102_s5, 2048  ;;  %p2203_p0 = pneg %p2512_p10 }
  0x38   : > { %p2202_p12 = scmp.ne.s32.totalorder %s3102_s5, %s2201_s8  ;;  %p2208_p4 = scmp.lt.u32.totalorder %s2201_s8, %s3102_s5 }
  0x3a   : > { %p2204_p1 = pnand %p2203_p0, %p2202_p12 }
  0x3c   : > { %p2205_p2 = pneg %p2204_p1 }
  0x3e   : > { %p2210_p6 = pnand %p2208_p4, %p2205_p2 }
  0x40   : > { %2213 = shalt.err (!%p2210_p6)
}
  0x41   : > { %s2214_s19 = scalar_lea.vmem %s214_s26, 2048  ;;  %p2222_p3 = scmp.lt.s32.totalorder %s214_s26, %s214_s26 }
  0x42   : > { %p2215_p8 = scmp.ne.s32.totalorder %s214_s26, %s2214_s19  ;;  %p2223_p11 = scmp.lt.s32.totalorder %s2214_s19, %s2214_s19 }
  0x44   : > { %p2217_p9 = pnand %p2215_p8, %p2203_p0  ;;  %p2224_p13 = por %p2223_p11, %p2222_p3 }
  0x46   : > { %p2218_p5 = pneg %p2217_p9 }
  0x48   : > { %p2225_p7 = pnand %p2224_p13, %p2218_p5 }
  0x4a   : > { %2228 = shalt.err (!%p2225_p7)
}
  0x4b   : > { %s2376_s25 = smov 128   ;;  %s2377_s29 = smov 8  }
  0x4c   : > { %2076 = dma.hbm_to_vmem [thread:$0]  (!%p2512_p10), %s3102_s5, 2048, %s214_s26, [#allocation10], %s2376_s25, %s2376_s25, %s2377_s29  }
  0x4d   : > { %p48_p11 = scmp.ge.s32.totalorder %s46_s28, 2  ;;  %s51_s9 = sld [smem:[#allocation4 + %s2367_s16]] }
  0x4e   : > { %p66_p13 = scmp.ne.s32.totalorder %s2359_s14, %s2355_s13  ;;  %s174_s0 = sadd.s32 1, %s2347_s11 }
  0x4f   : > { %s3127_s28 = smov (%p48_p11, %s46_s28), 0  ;;  %p67_p3 = scmp.eq.s32.totalorder %s2371_s17, 0 }
  0x50   : > { %3103 = sst [smem:[#allocation22_spill]] %s3127_s28  ;;  %s54_s18 = ssub.s32 %s2367_s16, %s3127_s28 }
  0x51   : > { %s53_s12 = sld [smem:[#allocation4 + %s3127_s28]]  ;;  %p172_p5 = scmp.eq.s32.totalorder %s54_s18, 0 }
  0x52   : > { %p2543_p7 = por %p67_p3, %p66_p13  ;;  %p2088_p9 = scmp.lt.s32.totalorder %s2371_s17, 2 }
  0x53   : > { %s2549_s26 = scalar_select %p172_p5, %s2347_s11, %s174_s0  }
  0x54   : > { %s230_s19 = sand.u32 1, %s2359_s14   ;;  %p2554_p10 = pnand %p2088_p9, %p2543_p7 }
  0x55   : > { %3105 = sst [smem:[#allocation23_spill]] %s2549_s26  ;;  %s59_s30 = sadd.s32 1, %s2359_s14 }
  0x56   : > { %s1769_s5 = sshll.u32 %s230_s19, 10  ;;  %s1789_s1 = sshll.u32 %s2367_s16, 7 }
  0x57   : > { %s55_s29 = ssub.s32 %s51_s9, %s53_s12  ;;  %s234_s11 = scalar_lea.vmem [#allocation6], %s1769_s5 }
  0x58   : > { %s56_s8 = sor.u32 %s55_s29, %s54_s18  ;;  %s246_s17 = sshll.u32 %s234_s11, 4  ;;  %s2568_s17 = int_to_ptr.vmem [resolvable:$true] %s246_s17 }
  0x59   : > { %p57_p12 = scmp.eq.s32.totalorder %s56_s8, 0  ;;  %s2575_s27 = scalar_lea.sflag [#allocation7], %s230_s19 }
  0x5a   : > { %s2065_s28 = scalar_select %p2543_p7, [#allocation4], [#allocation12] }
  0x5b   : > { %s2562_s23 = scalar_select %p57_p12, %s2359_s14, %s59_s30  }
  0x5c   : > { %s2066_s0 = scalar_select %p2543_p7, %s2367_s16, 0 }
  0x5d   : > { %s3129_s28 = smov (!%p2088_p9, %s2065_s28), [#allocation13]  ;;  %p2231_p1 = pneg %p2554_p10 }
  0x5e   : > { %s3131_s0 = smov (!%p2088_p9, %s2066_s0), 0  ;;  %s2234_s11 = scalar_lea.hbm %s3073_s2, 32768 }
  0x5f   : > { %s236_s26 = sld [smem:[%s3129_s28 + %s3131_s0]] }
  0x65   : > { %s1771_s9 = sshll.u32 %s236_s26, 2 }
  0x66   : > { %s243_s12 = sadd.s32 %s1789_s1, %s1771_s9 }
  0x67   : > { %s1773_s18 = sshll.u32 %s243_s12, 7 }
  0x68   : > { %s2573_s30 = scalar_lea.hbm %s3073_s2, %s1773_s18 }
  0x69   : > { %s2229_s28 = scalar_lea.hbm %s2573_s30, 16384  ;;  %p2235_p6 = scmp.lt.u32.totalorder %s2573_s30, %s3073_s2 }
  0x6a   : > { %p2230_p0 = scmp.ne.s32.totalorder %s2573_s30, %s2229_s28  ;;  %p2236_p8 = scmp.lt.u32.totalorder %s2234_s11, %s2229_s28 }
  0x6b   : > { %p2238_p13 = scmp.lt.u32.totalorder %s2229_s28, %s2573_s30 }
  0x6c   : > { %p2232_p2 = pnand %p2231_p1, %p2230_p0  ;;  %p2237_p11 = por %p2236_p8, %p2235_p6 }
  0x6e   : > { %p2233_p4 = pneg %p2232_p2  ;;  %p2239_p3 = por %p2238_p13, %p2237_p11 }
  0x70   : > { %p2240_p5 = pnand %p2239_p3, %p2233_p4 }
  0x72   : > { %2243 = shalt.err (!%p2240_p5)
}
  0x73   : > { %s2244_s19 = scalar_lea.vmem %s2568_s17, 16384  ;;  %s2378_s9 = smov [#allocation6]  }
  0x74   : > { %p2245_p7 = scmp.ne.s32.totalorder %s2568_s17, %s2244_s19  ;;  %s2249_s12 = sshll.u32 %s2378_s9, 4  ;;  %s2250_s12 = int_to_ptr.vmem [resolvable:$false] %s2249_s12 }
  0x75   : > { %s2251_s18 = scalar_lea.vmem %s2250_s12, 32768  ;;  %p2252_p0 = scmp.lt.s32.totalorder %s2568_s17, %s2250_s12 }
  0x76   : > { %p2247_p9 = pnand %p2245_p7, %p2231_p1  ;;  %p2253_p2 = scmp.lt.s32.totalorder %s2251_s18, %s2244_s19 }
  0x78   : > { %p2248_p12 = pneg %p2247_p9  ;;  %p2254_p6 = por %p2253_p2, %p2252_p0 }
  0x7a   : > { %p2255_p8 = pnand %p2254_p6, %p2248_p12 }
  0x7c   : > { %2258 = shalt.err (!%p2255_p8)
}
  0x7d   : > { %s2379_s29 = smov 512   ;;  %s2380_s8 = smov 32  }
  0x7e   : > { %2082 = dma.hbm_to_vmem [thread:$0]  (!%p2554_p10), %s2573_s30, 16384, %s2568_s17, %s2575_s27, %s2379_s29, %s2379_s29, %s2380_s8  }
  0x7f   : > { %p3107_p1 = scmp.ne.s32.totalorder %s3100_s24, 0 }
  0x80   : > { %s269_s28 = sand.u32 (!%p3107_p1), 1, %s2355_s13   ;;  %p3108_p4 = scmp.ne.s32.totalorder (!%p3107_p1), %s3096_s21, 0 }
  0x81   : > { %267 = sbr.rel (%p3107_p1) target bundleno = 857 (0x359), region = 40  ;;  %s1775_s5 = sshll.u32 (!%p3107_p1), %s269_s28, 10 }
  0x82   : > { %s270_s1 = scalar_lea.sflag (!%p3107_p1), [#allocation7], %s269_s28  ;;  %s2606_s11 = scalar_lea.vmem (!%p3107_p1), [#allocation6], %s1775_s5 }
  0x88   : > { %2326 = dma.done.wait (%p3108_p4), %s270_s1, 16384  }
  0x89   : > { %2328 = vsyncadd (%p3108_p4), %s270_s1, 4294950912  ;;  %p3109_p11 = scmp.ne.s32.totalorder %s3095_s20, 0 }
  0x8b   : > { %2330 = dma.done.wait (%p3109_p11), [#allocation10], 2048  }
  0x8c   : > { %2332 = vsyncadd (%p3109_p11), [#allocation10], 4294965248  ;;  %s306_s17 = sand.u32 1, %s2343_s10   ;;  %s1778_s24 = sshll.u32 %s2363_s15, 5  ;;  %v2381_v0 = vmov 0.0  }
  0x8d   : > { %s2619_s25 = sld [smem:[#allocation5 + %s2363_s15]]  ;;  %s2623_s30 = sshll.u32 %s306_s17, 8  ;;  %324 = vst [vmem:[#allocation2] sm:$0xff] %v2381_v0  ;;  %325 = vst [vmem:[#allocation2 + $0x8] sm:$0xff] %v2381_v0 }
  0x8e   : > { %326 = vst [vmem:[#allocation2 + $0x10] sm:$0xff] %v2381_v0  ;;  %327 = vst [vmem:[#allocation2 + $0x18] sm:$0xff] %v2381_v0  ;;  %p314_p10 = scmp.lt.s32.totalorder %s1778_s24, 63  ;;  %s2635_s0 = scalar_lea.vmem [#allocation11], %s2623_s30 }
  0x8f   : > { %328 = vst [vmem:[#allocation2 + $0x20] sm:$0xff] %v2381_v0  ;;  %329 = vst [vmem:[#allocation2 + $0x28] sm:$0xff] %v2381_v0 }
  0x90   : > { %330 = vst [vmem:[#allocation2 + $0x30] sm:$0xff] %v2381_v0  ;;  %331 = vst [vmem:[#allocation2 + $0x38] sm:$0xff] %v2381_v0  ;;  %s3133_s24 = smov (!%p314_p10, %s1778_s24), 63 }
  0x91   : > { %332 = vst [vmem:[#allocation2 + $0x40] sm:$0xff] %v2381_v0  ;;  %333 = vst [vmem:[#allocation2 + $0x48] sm:$0xff] %v2381_v0  ;;  %s1779_s20 = sshll.u32 %s3133_s24, 3 }
  0x92   : > { %334 = vst [vmem:[#allocation2 + $0x50] sm:$0xff] %v2381_v0  ;;  %335 = vst [vmem:[#allocation2 + $0x58] sm:$0xff] %v2381_v0  ;;  %s2632_s26 = scalar_lea.vmem %s3075_s4, %s1779_s20 }
  0x93   : > { %336 = vst [vmem:[#allocation2 + $0x60] sm:$0xff] %v2381_v0  ;;  %337 = vst [vmem:[#allocation2 + $0x68] sm:$0xff] %v2381_v0  ;;  %p1781_p13 = scmp.le.s32.totalorder %s2619_s25, 0 }
  0x94   : > { %338 = vst [vmem:[#allocation2 + $0x70] sm:$0xff] %v2381_v0  ;;  %339 = vst [vmem:[#allocation2 + $0x78] sm:$0xff] %v2381_v0  ;;  %s362_s19 = sld [smem:[#allocation4 + %s2363_s15]] (!%p1781_p13)  ;;  %v462_v1 = vld [vmem:[%s2606_s11 + $0x8] sm:$0xff] (!%p1781_p13)  ;;  %v464_v2 = vld [vmem:[%s2606_s11 + $0x18] sm:$0xff] (!%p1781_p13)  ;;  %v2382_v3 = vmov (!%p1781_p13), 0.0|0.0  }
  0x95   : > { %340 = vst [vmem:[#allocation2 + $0x80] sm:$0xff] %v2381_v0  ;;  %341 = vst [vmem:[#allocation2 + $0x88] sm:$0xff] %v2381_v0  ;;  %1919 = vmatprep.subr.bf16.mxu0 (!%p1781_p13), %v2382_v3  ;;  %1967 = vmatprep.subr.bf16.mxu1 (!%p1781_p13), %v2382_v3 }
  0x96   : > { %342 = vst [vmem:[#allocation2 + $0x90] sm:$0xff] %v2381_v0  ;;  %343 = vst [vmem:[#allocation2 + $0x98] sm:$0xff] %v2381_v0  ;;  %360 = sbr.rel (%p1781_p13) target bundleno = 564 (0x234), region = 56  ;;  %653 = vmatprep.mubr.f32.mxu0 (!%p1781_p13), %v462_v1  ;;  %878 = vmatprep.mubr.f32.mxu1 (!%p1781_p13), %v464_v2 }
  0x97   : > { %344 = vst [vmem:[#allocation2 + $0xa0] sm:$0xff] %v2381_v0  ;;  %345 = vst [vmem:[#allocation2 + $0xa8] sm:$0xff] %v2381_v0 }
  0x98   : > { %346 = vst [vmem:[#allocation2 + $0xb0] sm:$0xff] %v2381_v0  ;;  %347 = vst [vmem:[#allocation2 + $0xb8] sm:$0xff] %v2381_v0 }
  0x99   : > { %348 = vst [vmem:[#allocation2 + $0xc0] sm:$0xff] %v2381_v0  ;;  %349 = vst [vmem:[#allocation2 + $0xc8] sm:$0xff] %v2381_v0 }
  0x9a   : > { %350 = vst [vmem:[#allocation2 + $0xd0] sm:$0xff] %v2381_v0  ;;  %351 = vst [vmem:[#allocation2 + $0xd8] sm:$0xff] %v2381_v0  ;;  %s1782_s9 = sshll.u32 (!%p1781_p13), %s362_s19, 9 }
  0x9b   : > { %352 = vst [vmem:[#allocation2 + $0xe0] sm:$0xff] %v2381_v0  ;;  %353 = vst [vmem:[#allocation2 + $0xe8] sm:$0xff] %v2381_v0  ;;  %s2646_s29 = scalar_lea.vmem (!%p1781_p13), %s3074_s3, %s1782_s9 }
  0x9c   : > { %354 = vst [vmem:[#allocation2 + $0xf0] sm:$0xff] %v2381_v0  ;;  %355 = vst [vmem:[#allocation2 + $0xf8] sm:$0xff] %v2381_v0  ;;  %v365_v4 = vld [vmem:[%s2646_s29] sm:$0xff] (!%p1781_p13)  ;;  %v366_v5 = vld [vmem:[%s2646_s29 + $0x8] sm:$0xff] (!%p1781_p13) }
  0x9d   : > { %v397_v6 = vld [vmem:[%s2646_s29 + $0x100] sm:$0xff]  ;;  %v1920_v7 = vpack.c.bf16 %v366_v5, %v365_v4  ;;  %v398_v8 = vld [vmem:[%s2646_s29 + $0x108] sm:$0xff]  ;;  %v367_v9 = vld [vmem:[%s2646_s29 + $0x10] sm:$0xff] }
  0x9e   : > { %v368_v10 = vld [vmem:[%s2646_s29 + $0x18] sm:$0xff]  ;;  %v1968_v11 = vpack.c.bf16 %v398_v8, %v397_v6  ;;  %v399_v12 = vld [vmem:[%s2646_s29 + $0x110] sm:$0xff]  ;;  %v369_v16 = vld [vmem:[%s2646_s29 + $0x20] sm:$0xff] }
  0x9f   : > { %v400_v13 = vld [vmem:[%s2646_s29 + $0x118] sm:$0xff]  ;;  %1921 = vmatpush1.bf16.msra.mxu0 %v1920_v7  ;;  %v1923_v14 = vpack.c.bf16 %v368_v10, %v367_v9  ;;  %v370_v17 = vld [vmem:[%s2646_s29 + $0x28] sm:$0xff]  ;;  %v401_v18 = vld [vmem:[%s2646_s29 + $0x120] sm:$0xff] }
  0xa0   : > { %1969 = vmatpush1.bf16.msra.mxu1 %v1968_v11  ;;  %1922 = vmatprep.subr.bf16.mxu0 %v2382_v3  ;;  %v1971_v15 = vpack.c.bf16 %v400_v13, %v399_v12  ;;  %v402_v19 = vld [vmem:[%s2646_s29 + $0x128] sm:$0xff]  ;;  %v1926_v20 = vpack.c.bf16 %v370_v17, %v369_v16  ;;  %v371_v22 = vld [vmem:[%s2646_s29 + $0x30] sm:$0xff]  ;;  %v372_v23 = vld [vmem:[%s2646_s29 + $0x38] sm:$0xff] }
  0xa1   : > { %1970 = vmatprep.subr.bf16.mxu1 %v2382_v3  ;;  %v1974_v21 = vpack.c.bf16 %v402_v19, %v401_v18  ;;  %v403_v24 = vld [vmem:[%s2646_s29 + $0x130] sm:$0xff]  ;;  %v404_v25 = vld [vmem:[%s2646_s29 + $0x138] sm:$0xff]  ;;  %v1929_v26 = vpack.c.bf16 %v372_v23, %v371_v22  ;;  %v373_v28 = vld [vmem:[%s2646_s29 + $0x40] sm:$0xff] }
  0xa2   : > { %v1977_v27 = vpack.c.bf16 %v404_v25, %v403_v24  ;;  %v374_v29 = vld [vmem:[%s2646_s29 + $0x48] sm:$0xff]  ;;  %v405_v30 = vld [vmem:[%s2646_s29 + $0x140] sm:$0xff]  ;;  %v375_v34 = vld [vmem:[%s2646_s29 + $0x50] sm:$0xff] }
  0xa3   : > { %1924 = vmatpush1.bf16.msra.mxu0 %v1923_v14  ;;  %v406_v31 = vld [vmem:[%s2646_s29 + $0x148] sm:$0xff]  ;;  %v1932_v32 = vpack.c.bf16 %v374_v29, %v373_v28  ;;  %v376_v35 = vld [vmem:[%s2646_s29 + $0x58] sm:$0xff]  ;;  %v407_v36 = vld [vmem:[%s2646_s29 + $0x150] sm:$0xff] }
  0xa4   : > { %1972 = vmatpush1.bf16.msra.mxu1 %v1971_v15  ;;  %1925 = vmatprep.subr.bf16.mxu0 %v2382_v3  ;;  %v1980_v33 = vpack.c.bf16 %v406_v31, %v405_v30  ;;  %v408_v37 = vld [vmem:[%s2646_s29 + $0x158] sm:$0xff]  ;;  %v1935_v38 = vpack.c.bf16 %v376_v35, %v375_v34  ;;  %v377_v40 = vld [vmem:[%s2646_s29 + $0x60] sm:$0xff]  ;;  %v378_v41 = vld [vmem:[%s2646_s29 + $0x68] sm:$0xff] }
  0xa5   : > { %1973 = vmatprep.subr.bf16.mxu1 %v2382_v3  ;;  %v1983_v39 = vpack.c.bf16 %v408_v37, %v407_v36  ;;  %v409_v42 = vld [vmem:[%s2646_s29 + $0x160] sm:$0xff]  ;;  %v410_v43 = vld [vmem:[%s2646_s29 + $0x168] sm:$0xff]  ;;  %v1938_v44 = vpack.c.bf16 %v378_v41, %v377_v40  ;;  %v379_v46 = vld [vmem:[%s2646_s29 + $0x70] sm:$0xff] }
  0xa6   : > { %v1986_v45 = vpack.c.bf16 %v410_v43, %v409_v42  ;;  %v380_v47 = vld [vmem:[%s2646_s29 + $0x78] sm:$0xff]  ;;  %v411_v48 = vld [vmem:[%s2646_s29 + $0x170] sm:$0xff]  ;;  %v381_v52 = vld [vmem:[%s2646_s29 + $0x80] sm:$0xff] }
  0xa7   : > { %1927 = vmatpush1.bf16.msra.mxu0 %v1926_v20  ;;  %v412_v49 = vld [vmem:[%s2646_s29 + $0x178] sm:$0xff]  ;;  %v1941_v50 = vpack.c.bf16 %v380_v47, %v379_v46  ;;  %v382_v53 = vld [vmem:[%s2646_s29 + $0x88] sm:$0xff]  ;;  %v413_v54 = vld [vmem:[%s2646_s29 + $0x180] sm:$0xff] }
  0xa8   : > { %1975 = vmatpush1.bf16.msra.mxu1 %v1974_v21  ;;  %1928 = vmatprep.subr.bf16.mxu0 %v2382_v3  ;;  %v1989_v51 = vpack.c.bf16 %v412_v49, %v411_v48  ;;  %v414_v55 = vld [vmem:[%s2646_s29 + $0x188] sm:$0xff]  ;;  %v1944_v56 = vpack.c.bf16 %v382_v53, %v381_v52  ;;  %v383_v58 = vld [vmem:[%s2646_s29 + $0x90] sm:$0xff]  ;;  %v384_v59 = vld [vmem:[%s2646_s29 + $0x98] sm:$0xff] }
  0xa9   : > { %1976 = vmatprep.subr.bf16.mxu1 %v2382_v3  ;;  %v1992_v57 = vpack.c.bf16 %v414_v55, %v413_v54  ;;  %v415_v60 = vld [vmem:[%s2646_s29 + $0x190] sm:$0xff]  ;;  %v416_v61 = vld [vmem:[%s2646_s29 + $0x198] sm:$0xff]  ;;  %v1947_v62 = vpack.c.bf16 %v384_v59, %v383_v58  ;;  %v385_v0 = vld [vmem:[%s2646_s29 + $0xa0] sm:$0xff] }
  0xaa   : > { %v1995_v63 = vpack.c.bf16 %v416_v61, %v415_v60  ;;  %v386_v1 = vld [vmem:[%s2646_s29 + $0xa8] sm:$0xff]  ;;  %v417_v2 = vld [vmem:[%s2646_s29 + $0x1a0] sm:$0xff]  ;;  %v387_v7 = vld [vmem:[%s2646_s29 + $0xb0] sm:$0xff] }
  0xab   : > { %1930 = vmatpush1.bf16.msra.mxu0 %v1929_v26  ;;  %v418_v4 = vld [vmem:[%s2646_s29 + $0x1a8] sm:$0xff]  ;;  %v1950_v5 = vpack.c.bf16 %v386_v1, %v385_v0  ;;  %v388_v8 = vld [vmem:[%s2646_s29 + $0xb8] sm:$0xff]  ;;  %v419_v9 = vld [vmem:[%s2646_s29 + $0x1b0] sm:$0xff] }
  0xac   : > { %1978 = vmatpush1.bf16.msra.mxu1 %v1977_v27  ;;  %1931 = vmatprep.subr.bf16.mxu0 %v2382_v3  ;;  %v1998_v6 = vpack.c.bf16 %v418_v4, %v417_v2  ;;  %v420_v10 = vld [vmem:[%s2646_s29 + $0x1b8] sm:$0xff]  ;;  %v1953_v11 = vpack.c.bf16 %v388_v8, %v387_v7  ;;  %v389_v13 = vld [vmem:[%s2646_s29 + $0xc0] sm:$0xff]  ;;  %v390_v14 = vld [vmem:[%s2646_s29 + $0xc8] sm:$0xff] }
  0xad   : > { %1979 = vmatprep.subr.bf16.mxu1 %v2382_v3  ;;  %v2001_v12 = vpack.c.bf16 %v420_v10, %v419_v9  ;;  %v421_v15 = vld [vmem:[%s2646_s29 + $0x1c0] sm:$0xff]  ;;  %v422_v16 = vld [vmem:[%s2646_s29 + $0x1c8] sm:$0xff]  ;;  %v1956_v17 = vpack.c.bf16 %v390_v14, %v389_v13  ;;  %v391_v19 = vld [vmem:[%s2646_s29 + $0xd0] sm:$0xff] }
  0xae   : > { %v2004_v18 = vpack.c.bf16 %v422_v16, %v421_v15  ;;  %v392_v20 = vld [vmem:[%s2646_s29 + $0xd8] sm:$0xff]  ;;  %v423_v21 = vld [vmem:[%s2646_s29 + $0x1d0] sm:$0xff]  ;;  %v393_v25 = vld [vmem:[%s2646_s29 + $0xe0] sm:$0xff] }
  0xaf   : > { %1933 = vmatpush1.bf16.msra.mxu0 %v1932_v32  ;;  %v424_v22 = vld [vmem:[%s2646_s29 + $0x1d8] sm:$0xff]  ;;  %v1959_v23 = vpack.c.bf16 %v392_v20, %v391_v19  ;;  %v394_v26 = vld [vmem:[%s2646_s29 + $0xe8] sm:$0xff]  ;;  %v425_v27 = vld [vmem:[%s2646_s29 + $0x1e0] sm:$0xff] }
  0xb0   : > { %1981 = vmatpush1.bf16.msra.mxu1 %v1980_v33  ;;  %1934 = vmatprep.subr.bf16.mxu0 %v2382_v3  ;;  %v2007_v24 = vpack.c.bf16 %v424_v22, %v423_v21  ;;  %v426_v28 = vld [vmem:[%s2646_s29 + $0x1e8] sm:$0xff]  ;;  %v1962_v29 = vpack.c.bf16 %v394_v26, %v393_v25  ;;  %v395_v31 = vld [vmem:[%s2646_s29 + $0xf0] sm:$0xff]  ;;  %v396_v32 = vld [vmem:[%s2646_s29 + $0xf8] sm:$0xff] }
  0xb1   : > { %1982 = vmatprep.subr.bf16.mxu1 %v2382_v3  ;;  %v2010_v30 = vpack.c.bf16 %v426_v28, %v425_v27  ;;  %v427_v33 = vld [vmem:[%s2646_s29 + $0x1f0] sm:$0xff]  ;;  %v428_v34 = vld [vmem:[%s2646_s29 + $0x1f8] sm:$0xff]  ;;  %v1965_v35 = vpack.c.bf16 %v396_v32, %v395_v31  ;;  %v461_v37 = vld [vmem:[%s2606_s11] sm:$0xff] }
  0xb2   : > { %v2013_v36 = vpack.c.bf16 %v428_v34, %v427_v33  ;;  %v468_v40 = vld [vmem:[%s2606_s11 + $0x38] sm:$0xff]  ;;  %v465_v41 = vld [vmem:[%s2606_s11 + $0x20] sm:$0xff]  ;;  %v467_v42 = vld [vmem:[%s2606_s11 + $0x30] sm:$0xff] }
  0xb3   : > { %1936 = vmatpush1.bf16.msra.mxu0 %v1935_v38  ;;  %v463_v38 = vld [vmem:[%s2606_s11 + $0x10] sm:$0xff]  ;;  %v470_v43 = vld [vmem:[%s2606_s11 + $0x48] sm:$0xff]  ;;  %v476_v47 = vld [vmem:[%s2606_s11 + $0x78] sm:$0xff] }
  0xb4   : > { %1984 = vmatpush1.bf16.msra.mxu1 %v1983_v39  ;;  %1937 = vmatprep.subr.bf16.mxu0 %v2382_v3  ;;  %v466_v39 = vld [vmem:[%s2606_s11 + $0x28] sm:$0xff]  ;;  %v473_v48 = vld [vmem:[%s2606_s11 + $0x60] sm:$0xff]  ;;  %v475_v49 = vld [vmem:[%s2606_s11 + $0x70] sm:$0xff] }
  0xb5   : > { %1985 = vmatprep.subr.bf16.mxu1 %v2382_v3  ;;  %v474_v46 = vld [vmem:[%s2606_s11 + $0x68] sm:$0xff]  ;;  %v477_v52 = vld [vmem:[%s2606_s11 + $0x80] sm:$0xff]  ;;  %v479_v53 = vld [vmem:[%s2606_s11 + $0x90] sm:$0xff] }
  0xb6   : > { %v482_v54 = vld [vmem:[%s2606_s11 + $0xa8] sm:$0xff]  ;;  %v484_v55 = vld [vmem:[%s2606_s11 + $0xb8] sm:$0xff]  ;;  %v485_v60 = vld [vmem:[%s2606_s11 + $0xc0] sm:$0xff] }
  0xb7   : > { %1939 = vmatpush1.bf16.msra.mxu0 %v1938_v44  ;;  %v469_v44 = vld [vmem:[%s2606_s11 + $0x40] sm:$0xff]  ;;  %v486_v58 = vld [vmem:[%s2606_s11 + $0xc8] sm:$0xff]  ;;  %v488_v59 = vld [vmem:[%s2606_s11 + $0xd8] sm:$0xff] }
  0xb8   : > { %1987 = vmatpush1.bf16.msra.mxu1 %v1986_v45  ;;  %1940 = vmatprep.subr.bf16.mxu0 %v2382_v3  ;;  %v471_v45 = vld [vmem:[%s2606_s11 + $0x50] sm:$0xff]  ;;  %v489_v0 = vld [vmem:[%s2606_s11 + $0xe0] sm:$0xff]  ;;  %v494_v2 = vld [vmem:[%s2606_s11 + $0x108] sm:$0xff] }
  0xb9   : > { %1988 = vmatprep.subr.bf16.mxu1 %v2382_v3  ;;  %v487_v61 = vld [vmem:[%s2606_s11 + $0xd0] sm:$0xff]  ;;  %v496_v4 = vld [vmem:[%s2606_s11 + $0x118] sm:$0xff]  ;;  %v498_v7 = vld [vmem:[%s2606_s11 + $0x128] sm:$0xff] }
  0xba   : > { %v491_v1 = vld [vmem:[%s2606_s11 + $0xf0] sm:$0xff]  ;;  %v500_v8 = vld [vmem:[%s2606_s11 + $0x138] sm:$0xff]  ;;  %v497_v9 = vld [vmem:[%s2606_s11 + $0x120] sm:$0xff] }
  0xbb   : > { %1942 = vmatpush1.bf16.msra.mxu0 %v1941_v50  ;;  %v478_v50 = vld [vmem:[%s2606_s11 + $0x88] sm:$0xff]  ;;  %v499_v10 = vld [vmem:[%s2606_s11 + $0x130] sm:$0xff]  ;;  %v501_v13 = vld [vmem:[%s2606_s11 + $0x140] sm:$0xff] }
  0xbc   : > { %1990 = vmatpush1.bf16.msra.mxu1 %v1989_v51  ;;  %1943 = vmatprep.subr.bf16.mxu0 %v2382_v3  ;;  %v480_v51 = vld [vmem:[%s2606_s11 + $0x98] sm:$0xff]  ;;  %v503_v14 = vld [vmem:[%s2606_s11 + $0x150] sm:$0xff]  ;;  %v506_v15 = vld [vmem:[%s2606_s11 + $0x168] sm:$0xff] }
  0xbd   : > { %1991 = vmatprep.subr.bf16.mxu1 %v2382_v3  ;;  %v508_v16 = vld [vmem:[%s2606_s11 + $0x178] sm:$0xff]  ;;  %v510_v19 = vld [vmem:[%s2606_s11 + $0x188] sm:$0xff]  ;;  %v509_v21 = vld [vmem:[%s2606_s11 + $0x180] sm:$0xff] }
  0xbe   : > { %v512_v20 = vld [vmem:[%s2606_s11 + $0x198] sm:$0xff]  ;;  %v511_v22 = vld [vmem:[%s2606_s11 + $0x190] sm:$0xff]  ;;  %v513_v25 = vld [vmem:[%s2606_s11 + $0x1a0] sm:$0xff] }
  0xbf   : > { %1945 = vmatpush1.bf16.msra.mxu0 %v1944_v56  ;;  %v481_v56 = vld [vmem:[%s2606_s11 + $0xa0] sm:$0xff]  ;;  %v515_v26 = vld [vmem:[%s2606_s11 + $0x1b0] sm:$0xff]  ;;  %v518_v27 = vld [vmem:[%s2606_s11 + $0x1c8] sm:$0xff] }
  0xc0   : > { %1993 = vmatpush1.bf16.msra.mxu1 %v1992_v57  ;;  %1946 = vmatprep.subr.bf16.mxu0 %v2382_v3  ;;  %v483_v57 = vld [vmem:[%s2606_s11 + $0xb0] sm:$0xff]  ;;  %v520_v28 = vld [vmem:[%s2606_s11 + $0x1d8] sm:$0xff]  ;;  %v522_v31 = vld [vmem:[%s2606_s11 + $0x1e8] sm:$0xff] }
  0xc1   : > { %1994 = vmatprep.subr.bf16.mxu1 %v2382_v3  ;;  %v524_v32 = vld [vmem:[%s2606_s11 + $0x1f8] sm:$0xff]  ;;  %v521_v33 = vld [vmem:[%s2606_s11 + $0x1e0] sm:$0xff]  ;;  %v523_v34 = vld [vmem:[%s2606_s11 + $0x1f0] sm:$0xff] }
  0xc3   : > { %1948 = vmatpush1.bf16.msra.mxu0 %v1947_v62  ;;  %v490_v62 = vld [vmem:[%s2606_s11 + $0xe8] sm:$0xff] }
  0xc4   : > { %1996 = vmatpush1.bf16.msra.mxu1 %v1995_v63  ;;  %1949 = vmatprep.subr.bf16.mxu0 %v2382_v3  ;;  %v492_v63 = vld [vmem:[%s2606_s11 + $0xf8] sm:$0xff] }
  0xc5   : > { %1997 = vmatprep.subr.bf16.mxu1 %v2382_v3 }
  0xc7   : > { %1951 = vmatpush1.bf16.msra.mxu0 %v1950_v5  ;;  %v493_v5 = vld [vmem:[%s2606_s11 + $0x100] sm:$0xff] }
  0xc8   : > { %1999 = vmatpush1.bf16.msra.mxu1 %v1998_v6  ;;  %1952 = vmatprep.subr.bf16.mxu0 %v2382_v3  ;;  %v495_v6 = vld [vmem:[%s2606_s11 + $0x110] sm:$0xff] }
  0xc9   : > { %2000 = vmatprep.subr.bf16.mxu1 %v2382_v3 }
  0xcb   : > { %1954 = vmatpush1.bf16.msra.mxu0 %v1953_v11  ;;  %v502_v11 = vld [vmem:[%s2606_s11 + $0x148] sm:$0xff] }
  0xcc   : > { %2002 = vmatpush1.bf16.msra.mxu1 %v2001_v12  ;;  %1955 = vmatprep.subr.bf16.mxu0 %v2382_v3  ;;  %v504_v12 = vld [vmem:[%s2606_s11 + $0x158] sm:$0xff] }
  0xcd   : > { %2003 = vmatprep.subr.bf16.mxu1 %v2382_v3 }
  0xcf   : > { %1957 = vmatpush1.bf16.msra.mxu0 %v1956_v17  ;;  %v505_v17 = vld [vmem:[%s2606_s11 + $0x160] sm:$0xff] }
  0xd0   : > { %2005 = vmatpush1.bf16.msra.mxu1 %v2004_v18  ;;  %1958 = vmatprep.subr.bf16.mxu0 %v2382_v3  ;;  %v507_v18 = vld [vmem:[%s2606_s11 + $0x170] sm:$0xff] }
  0xd1   : > { %2006 = vmatprep.subr.bf16.mxu1 %v2382_v3 }
  0xd3   : > { %1960 = vmatpush1.bf16.msra.mxu0 %v1959_v23  ;;  %v514_v23 = vld [vmem:[%s2606_s11 + $0x1a8] sm:$0xff] }
  0xd4   : > { %2008 = vmatpush1.bf16.msra.mxu1 %v2007_v24  ;;  %1961 = vmatprep.subr.bf16.mxu0 %v2382_v3  ;;  %v516_v24 = vld [vmem:[%s2606_s11 + $0x1b8] sm:$0xff] }
  0xd5   : > { %2009 = vmatprep.subr.bf16.mxu1 %v2382_v3 }
  0xd7   : > { %1963 = vmatpush1.bf16.msra.mxu0 %v1962_v29  ;;  %v517_v29 = vld [vmem:[%s2606_s11 + $0x1c0] sm:$0xff] }
  0xd8   : > { %2011 = vmatpush1.bf16.msra.mxu1 %v2010_v30  ;;  %1964 = vmatprep.subr.bf16.mxu0 %v2382_v3  ;;  %v519_v30 = vld [vmem:[%s2606_s11 + $0x1d0] sm:$0xff] }
  0xd9   : > { %2012 = vmatprep.subr.bf16.mxu1 %v2382_v3  ;;  %v472_v3 = vld [vmem:[%s2606_s11 + $0x58] sm:$0xff] }
  0xdb   : > { %1966 = vmatpush1.bf16.msra.mxu0 %v1965_v35  ;;  %v526_v35 = vld [vmem:[%s2606_s11 + $0x208] sm:$0xff] }
  0xdc   : > { %2014 = vmatpush1.bf16.msra.mxu1 %v2013_v36  ;;  %v528_v36 = vld [vmem:[%s2606_s11 + $0x218] sm:$0xff] }
  0xde   : > { %654 = vmatmul.mubr.f32.vlgmr.msra.gmra.mrb[0].mxu0 %v461_v37  ;;  %v525_v37 = vld [vmem:[%s2606_s11 + $0x200] sm:$0xff] }
  0xdf   : > { %879 = vmatmul.mubr.f32.vlgmr.msra.gmra.mrb[0].mxu1 %v463_v38  ;;  %658 = vmatprep.mubr.f32.mxu0 %v466_v39  ;;  %v527_v38 = vld [vmem:[%s2606_s11 + $0x210] sm:$0xff]  ;;  %v530_v39 = vld [vmem:[%s2606_s11 + $0x228] sm:$0xff] }
  0xe0   : > { %883 = vmatprep.mubr.f32.mxu1 %v468_v40  ;;  %v532_v40 = vld [vmem:[%s2606_s11 + $0x238] sm:$0xff] }
  0xe2   : > { %659 = vmatmul.mubr.f32.gmra.mrb[2].mxu0 %v465_v41  ;;  %v529_v41 = vld [vmem:[%s2606_s11 + $0x220] sm:$0xff] }
  0xe3   : > { %884 = vmatmul.mubr.f32.gmra.mrb[2].mxu1 %v467_v42  ;;  %663 = vmatprep.mubr.f32.mxu0 %v470_v43  ;;  %v531_v42 = vld [vmem:[%s2606_s11 + $0x230] sm:$0xff]  ;;  %v534_v43 = vld [vmem:[%s2606_s11 + $0x248] sm:$0xff] }
  0xe4   : > { %888 = vmatprep.mubr.f32.mxu1 %v472_v3  ;;  %v536_v3 = vld [vmem:[%s2606_s11 + $0x258] sm:$0xff] }
  0xe6   : > { %664 = vmatmul.mubr.f32.gmra.mrb[4].mxu0 %v469_v44  ;;  %v533_v44 = vld [vmem:[%s2606_s11 + $0x240] sm:$0xff] }
  0xe7   : > { %889 = vmatmul.mubr.f32.gmra.mrb[4].mxu1 %v471_v45  ;;  %668 = vmatprep.mubr.f32.mxu0 %v474_v46  ;;  %v535_v45 = vld [vmem:[%s2606_s11 + $0x250] sm:$0xff]  ;;  %v538_v46 = vld [vmem:[%s2606_s11 + $0x268] sm:$0xff] }
  0xe8   : > { %893 = vmatprep.mubr.f32.mxu1 %v476_v47  ;;  %v540_v47 = vld [vmem:[%s2606_s11 + $0x278] sm:$0xff] }
  0xea   : > { %669 = vmatmul.mubr.f32.gmra.mrb[6].mxu0 %v473_v48  ;;  %v537_v48 = vld [vmem:[%s2606_s11 + $0x260] sm:$0xff] }
  0xeb   : > { %894 = vmatmul.mubr.f32.gmra.mrb[6].mxu1 %v475_v49  ;;  %673 = vmatprep.mubr.f32.mxu0 %v478_v50  ;;  %v539_v49 = vld [vmem:[%s2606_s11 + $0x270] sm:$0xff]  ;;  %v542_v50 = vld [vmem:[%s2606_s11 + $0x288] sm:$0xff] }
  0xec   : > { %898 = vmatprep.mubr.f32.mxu1 %v480_v51  ;;  %v544_v51 = vld [vmem:[%s2606_s11 + $0x298] sm:$0xff] }
  0xee   : > { %674 = vmatmul.mubr.f32.gmra.mrb[8].mxu0 %v477_v52  ;;  %v541_v52 = vld [vmem:[%s2606_s11 + $0x280] sm:$0xff] }
  0xef   : > { %899 = vmatmul.mubr.f32.gmra.mrb[8].mxu1 %v479_v53  ;;  %678 = vmatprep.mubr.f32.mxu0 %v482_v54  ;;  %v543_v53 = vld [vmem:[%s2606_s11 + $0x290] sm:$0xff]  ;;  %v546_v54 = vld [vmem:[%s2606_s11 + $0x2a8] sm:$0xff] }
  0xf0   : > { %903 = vmatprep.mubr.f32.mxu1 %v484_v55  ;;  %v548_v55 = vld [vmem:[%s2606_s11 + $0x2b8] sm:$0xff] }
  0xf2   : > { %679 = vmatmul.mubr.f32.gmra.mrb[10].mxu0 %v481_v56  ;;  %v545_v56 = vld [vmem:[%s2606_s11 + $0x2a0] sm:$0xff] }
  0xf3   : > { %904 = vmatmul.mubr.f32.gmra.mrb[10].mxu1 %v483_v57  ;;  %683 = vmatprep.mubr.f32.mxu0 %v486_v58  ;;  %v547_v57 = vld [vmem:[%s2606_s11 + $0x2b0] sm:$0xff]  ;;  %v550_v58 = vld [vmem:[%s2606_s11 + $0x2c8] sm:$0xff] }
  0xf4   : > { %908 = vmatprep.mubr.f32.mxu1 %v488_v59  ;;  %v552_v59 = vld [vmem:[%s2606_s11 + $0x2d8] sm:$0xff] }
  0xf6   : > { %684 = vmatmul.mubr.f32.gmra.mrb[12].mxu0 %v485_v60  ;;  %v549_v60 = vld [vmem:[%s2606_s11 + $0x2c0] sm:$0xff] }
  0xf7   : > { %909 = vmatmul.mubr.f32.gmra.mrb[12].mxu1 %v487_v61  ;;  %688 = vmatprep.mubr.f32.mxu0 %v490_v62  ;;  %v551_v61 = vld [vmem:[%s2606_s11 + $0x2d0] sm:$0xff]  ;;  %v554_v62 = vld [vmem:[%s2606_s11 + $0x2e8] sm:$0xff] }
  0xf8   : > { %913 = vmatprep.mubr.f32.mxu1 %v492_v63  ;;  %v556_v63 = vld [vmem:[%s2606_s11 + $0x2f8] sm:$0xff] }
  0xfa   : > { %689 = vmatmul.mubr.f32.gmra.mrb[14].mxu0 %v489_v0  ;;  %v553_v0 = vld [vmem:[%s2606_s11 + $0x2e0] sm:$0xff] }
  0xfb   : > { %914 = vmatmul.mubr.f32.gmra.mrb[14].mxu1 %v491_v1  ;;  %693 = vmatprep.mubr.f32.mxu0 %v494_v2  ;;  %v555_v1 = vld [vmem:[%s2606_s11 + $0x2f0] sm:$0xff]  ;;  %v558_v2 = vld [vmem:[%s2606_s11 + $0x308] sm:$0xff] }
  0xfc   : > { %918 = vmatprep.mubr.f32.mxu1 %v496_v4  ;;  %v560_v4 = vld [vmem:[%s2606_s11 + $0x318] sm:$0xff] }
  0xfe   : > { %694 = vmatmul.mubr.f32.gmra.mrb[16].mxu0 %v493_v5  ;;  %v557_v5 = vld [vmem:[%s2606_s11 + $0x300] sm:$0xff] }
  0xff   : > { %919 = vmatmul.mubr.f32.gmra.mrb[16].mxu1 %v495_v6  ;;  %698 = vmatprep.mubr.f32.mxu0 %v498_v7  ;;  %v559_v6 = vld [vmem:[%s2606_s11 + $0x310] sm:$0xff]  ;;  %v562_v7 = vld [vmem:[%s2606_s11 + $0x328] sm:$0xff] }
 0x100   : > { %923 = vmatprep.mubr.f32.mxu1 %v500_v8  ;;  %v564_v8 = vld [vmem:[%s2606_s11 + $0x338] sm:$0xff] }
 0x102   : > { %699 = vmatmul.mubr.f32.gmra.mrb[18].mxu0 %v497_v9  ;;  %v561_v9 = vld [vmem:[%s2606_s11 + $0x320] sm:$0xff] }
 0x103   : > { %924 = vmatmul.mubr.f32.gmra.mrb[18].mxu1 %v499_v10  ;;  %703 = vmatprep.mubr.f32.mxu0 %v502_v11  ;;  %v563_v10 = vld [vmem:[%s2606_s11 + $0x330] sm:$0xff]  ;;  %v566_v11 = vld [vmem:[%s2606_s11 + $0x348] sm:$0xff] }
 0x104   : > { %928 = vmatprep.mubr.f32.mxu1 %v504_v12  ;;  %v568_v12 = vld [vmem:[%s2606_s11 + $0x358] sm:$0xff] }
 0x106   : > { %704 = vmatmul.mubr.f32.gmra.mrb[20].mxu0 %v501_v13  ;;  %v565_v13 = vld [vmem:[%s2606_s11 + $0x340] sm:$0xff] }
 0x107   : > { %929 = vmatmul.mubr.f32.gmra.mrb[20].mxu1 %v503_v14  ;;  %708 = vmatprep.mubr.f32.mxu0 %v506_v15  ;;  %v567_v14 = vld [vmem:[%s2606_s11 + $0x350] sm:$0xff]  ;;  %v570_v15 = vld [vmem:[%s2606_s11 + $0x368] sm:$0xff] }
 0x108   : > { %933 = vmatprep.mubr.f32.mxu1 %v508_v16  ;;  %v572_v16 = vld [vmem:[%s2606_s11 + $0x378] sm:$0xff] }
 0x10a   : > { %709 = vmatmul.mubr.f32.gmra.mrb[22].mxu0 %v505_v17  ;;  %v569_v17 = vld [vmem:[%s2606_s11 + $0x360] sm:$0xff] }
 0x10b   : > { %934 = vmatmul.mubr.f32.gmra.mrb[22].mxu1 %v507_v18  ;;  %713 = vmatprep.mubr.f32.mxu0 %v510_v19  ;;  %v571_v18 = vld [vmem:[%s2606_s11 + $0x370] sm:$0xff]  ;;  %v574_v19 = vld [vmem:[%s2606_s11 + $0x388] sm:$0xff] }
 0x10c   : > { %938 = vmatprep.mubr.f32.mxu1 %v512_v20  ;;  %v576_v20 = vld [vmem:[%s2606_s11 + $0x398] sm:$0xff] }
 0x10e   : > { %714 = vmatmul.mubr.f32.gmra.mrb[24].mxu0 %v509_v21  ;;  %v573_v21 = vld [vmem:[%s2606_s11 + $0x380] sm:$0xff] }
 0x10f   : > { %939 = vmatmul.mubr.f32.gmra.mrb[24].mxu1 %v511_v22  ;;  %718 = vmatprep.mubr.f32.mxu0 %v514_v23  ;;  %v575_v22 = vld [vmem:[%s2606_s11 + $0x390] sm:$0xff]  ;;  %v578_v23 = vld [vmem:[%s2606_s11 + $0x3a8] sm:$0xff] }
 0x110   : > { %943 = vmatprep.mubr.f32.mxu1 %v516_v24  ;;  %v580_v24 = vld [vmem:[%s2606_s11 + $0x3b8] sm:$0xff] }
 0x112   : > { %719 = vmatmul.mubr.f32.gmra.mrb[26].mxu0 %v513_v25  ;;  %v577_v25 = vld [vmem:[%s2606_s11 + $0x3a0] sm:$0xff] }
 0x113   : > { %944 = vmatmul.mubr.f32.gmra.mrb[26].mxu1 %v515_v26  ;;  %723 = vmatprep.mubr.f32.mxu0 %v518_v27  ;;  %v579_v26 = vld [vmem:[%s2606_s11 + $0x3b0] sm:$0xff]  ;;  %v582_v27 = vld [vmem:[%s2606_s11 + $0x3c8] sm:$0xff] }
 0x114   : > { %948 = vmatprep.mubr.f32.mxu1 %v520_v28  ;;  %v584_v28 = vld [vmem:[%s2606_s11 + $0x3d8] sm:$0xff] }
 0x116   : > { %724 = vmatmul.mubr.f32.gmra.mrb[28].mxu0 %v517_v29  ;;  %v581_v29 = vld [vmem:[%s2606_s11 + $0x3c0] sm:$0xff] }
 0x117   : > { %949 = vmatmul.mubr.f32.gmra.mrb[28].mxu1 %v519_v30  ;;  %728 = vmatprep.mubr.f32.mxu0 %v522_v31  ;;  %v583_v30 = vld [vmem:[%s2606_s11 + $0x3d0] sm:$0xff]  ;;  %v586_v31 = vld [vmem:[%s2606_s11 + $0x3e8] sm:$0xff] }
 0x118   : > { %953 = vmatprep.mubr.f32.mxu1 %v524_v32  ;;  %v588_v32 = vld [vmem:[%s2606_s11 + $0x3f8] sm:$0xff] }
 0x11a   : > { %729 = vmatmul.mubr.f32.gmra.mrb[30].mxu0 %v521_v33  ;;  %v585_v33 = vld [vmem:[%s2606_s11 + $0x3e0] sm:$0xff] }
 0x11b   : > { %954 = vmatmul.mubr.f32.gmra.mrb[30].mxu1 %v523_v34  ;;  %733 = vmatprep.mubr.f32.mxu0 %v526_v35  ;;  %v587_v34 = vld [vmem:[%s2606_s11 + $0x3f0] sm:$0xff] }
 0x11c   : > { %958 = vmatprep.mubr.f32.mxu1 %v528_v36  ;;  %v429_v36 = vld [vmem:[#allocation2] sm:$0xff] }
 0x11e   : > { %734 = vmatmul.mubr.f32.gmra.mrb[32].mxu0 %v525_v37 }
 0x11f   : > { %959 = vmatmul.mubr.f32.gmra.mrb[32].mxu1 %v527_v38  ;;  %738 = vmatprep.mubr.f32.mxu0 %v530_v39 }
 0x120   : > { %963 = vmatprep.mubr.f32.mxu1 %v532_v40 }
 0x122   : > { %739 = vmatmul.mubr.f32.gmra.mrb[34].mxu0 %v529_v41 }
 0x123   : > { %964 = vmatmul.mubr.f32.gmra.mrb[34].mxu1 %v531_v42  ;;  %743 = vmatprep.mubr.f32.mxu0 %v534_v43  ;;  %v430_v43 = vld [vmem:[#allocation2 + $0x8] sm:$0xff] }
 0x124   : > { %968 = vmatprep.mubr.f32.mxu1 %v536_v3 }
 0x126   : > { %744 = vmatmul.mubr.f32.gmra.mrb[36].mxu0 %v533_v44 }
 0x127   : > { %969 = vmatmul.mubr.f32.gmra.mrb[36].mxu1 %v535_v45  ;;  %748 = vmatprep.mubr.f32.mxu0 %v538_v46 }
 0x128   : > { %973 = vmatprep.mubr.f32.mxu1 %v540_v47 }
 0x12a   : > { %749 = vmatmul.mubr.f32.gmra.mrb[38].mxu0 %v537_v48 }
 0x12b   : > { %974 = vmatmul.mubr.f32.gmra.mrb[38].mxu1 %v539_v49  ;;  %753 = vmatprep.mubr.f32.mxu0 %v542_v50  ;;  %v431_v49 = vld [vmem:[#allocation2 + $0x10] sm:$0xff] }
 0x12c   : > { %978 = vmatprep.mubr.f32.mxu1 %v544_v51 }
 0x12e   : > { %754 = vmatmul.mubr.f32.gmra.mrb[40].mxu0 %v541_v52 }
 0x12f   : > { %979 = vmatmul.mubr.f32.gmra.mrb[40].mxu1 %v543_v53  ;;  %758 = vmatprep.mubr.f32.mxu0 %v546_v54 }
 0x130   : > { %983 = vmatprep.mubr.f32.mxu1 %v548_v55 }
 0x132   : > { %759 = vmatmul.mubr.f32.gmra.mrb[42].mxu0 %v545_v56  ;;  %v432_v56 = vld [vmem:[#allocation2 + $0x18] sm:$0xff] }
 0x133   : > { %984 = vmatmul.mubr.f32.gmra.mrb[42].mxu1 %v547_v57  ;;  %763 = vmatprep.mubr.f32.mxu0 %v550_v58 }
 0x134   : > { %988 = vmatprep.mubr.f32.mxu1 %v552_v59 }
 0x136   : > { %764 = vmatmul.mubr.f32.gmra.mrb[44].mxu0 %v549_v60 }
 0x137   : > { %989 = vmatmul.mubr.f32.gmra.mrb[44].mxu1 %v551_v61  ;;  %768 = vmatprep.mubr.f32.mxu0 %v554_v62 }
 0x138   : > { %993 = vmatprep.mubr.f32.mxu1 %v556_v63  ;;  %v433_v63 = vld [vmem:[#allocation2 + $0x20] sm:$0xff] }
 0x13a   : > { %769 = vmatmul.mubr.f32.gmra.mrb[46].mxu0 %v553_v0 }
 0x13b   : > { %994 = vmatmul.mubr.f32.gmra.mrb[46].mxu1 %v555_v1  ;;  %773 = vmatprep.mubr.f32.mxu0 %v558_v2 }
 0x13c   : > { %998 = vmatprep.mubr.f32.mxu1 %v560_v4 }
 0x13e   : > { %774 = vmatmul.mubr.f32.gmra.mrb[48].mxu0 %v557_v5 }
 0x13f   : > { %999 = vmatmul.mubr.f32.gmra.mrb[48].mxu1 %v559_v6  ;;  %778 = vmatprep.mubr.f32.mxu0 %v562_v7  ;;  %v434_v7 = vld [vmem:[#allocation2 + $0x28] sm:$0xff] }
 0x140   : > { %1003 = vmatprep.mubr.f32.mxu1 %v564_v8 }
 0x142   : > { %779 = vmatmul.mubr.f32.gmra.mrb[50].mxu0 %v561_v9 }
 0x143   : > { %1004 = vmatmul.mubr.f32.gmra.mrb[50].mxu1 %v563_v10  ;;  %783 = vmatprep.mubr.f32.mxu0 %v566_v11 }
 0x144   : > { %1008 = vmatprep.mubr.f32.mxu1 %v568_v12 }
 0x146   : > { %784 = vmatmul.mubr.f32.gmra.mrb[52].mxu0 %v565_v13 }
 0x147   : > { %1009 = vmatmul.mubr.f32.gmra.mrb[52].mxu1 %v567_v14  ;;  %788 = vmatprep.mubr.f32.mxu0 %v570_v15  ;;  %v435_v14 = vld [vmem:[#allocation2 + $0x30] sm:$0xff] }
 0x148   : > { %1013 = vmatprep.mubr.f32.mxu1 %v572_v16 }
 0x14a   : > { %789 = vmatmul.mubr.f32.gmra.mrb[54].mxu0 %v569_v17 }
 0x14b   : > { %1014 = vmatmul.mubr.f32.gmra.mrb[54].mxu1 %v571_v18  ;;  %793 = vmatprep.mubr.f32.mxu0 %v574_v19 }
 0x14c   : > { %1018 = vmatprep.mubr.f32.mxu1 %v576_v20 }
 0x14e   : > { %794 = vmatmul.mubr.f32.gmra.mrb[56].mxu0 %v573_v21  ;;  %v436_v21 = vld [vmem:[#allocation2 + $0x38] sm:$0xff] }
 0x14f   : > { %1019 = vmatmul.mubr.f32.gmra.mrb[56].mxu1 %v575_v22  ;;  %798 = vmatprep.mubr.f32.mxu0 %v578_v23 }
 0x150   : > { %1023 = vmatprep.mubr.f32.mxu1 %v580_v24 }
 0x152   : > { %799 = vmatmul.mubr.f32.gmra.mrb[58].mxu0 %v577_v25 }
 0x153   : > { %1024 = vmatmul.mubr.f32.gmra.mrb[58].mxu1 %v579_v26  ;;  %803 = vmatprep.mubr.f32.mxu0 %v582_v27 }
 0x154   : > { %1028 = vmatprep.mubr.f32.mxu1 %v584_v28  ;;  %v437_v28 = vld [vmem:[#allocation2 + $0x40] sm:$0xff] }
 0x156   : > { %804 = vmatmul.mubr.f32.gmra.mrb[60].mxu0 %v581_v29 }
 0x157   : > { %1029 = vmatmul.mubr.f32.gmra.mrb[60].mxu1 %v583_v30  ;;  %808 = vmatprep.mubr.f32.mxu0 %v586_v31 }
 0x158   : > { %1033 = vmatprep.mubr.f32.mxu1 %v588_v32 }
 0x15a   : > { %809 = vmatmul.mubr.f32.gmra.mrb[62].mxu0 %v585_v33 }
 0x15b   : > { %1034 = vmatmul.mubr.f32.gmra.mrb[62].mxu1 %v587_v34 }
 0x1b1   : > { %v655_v35 = vpop.f32.mrb[0].mxu0 }
 0x1b2   : > { %v880_v37 = vpop.f32.mrb[0].mxu1  ;;  %v657_v38 = vpop.f32.mrb[1].mxu0 }
 0x1b3   : > { %v881_v39 = vadd.f32 %v880_v37, %v655_v35  ;;  %v882_v40 = vpop.f32.mrb[1].mxu1  ;;  %v438_v35 = vld [vmem:[#allocation2 + $0x48] sm:$0xff] }
 0x1b5   : > { %v1039_v41 = vadd.f32 %v881_v39, %v429_v36  ;;  %v660_v42 = vpop.f32.mrb[2].mxu0 }
 0x1b6   : > { %v885_v3 = vpop.f32.mrb[2].mxu1  ;;  %v662_v44 = vpop.f32.mrb[3].mxu0 }
 0x1b7   : > { %1071 = vst [vmem:[#allocation2] sm:$0xff] %v1039_v41  ;;  %v886_v45 = vadd.f32 %v885_v3, %v660_v42  ;;  %v887_v46 = vpop.f32.mrb[3].mxu1  ;;  %v439_v42 = vld [vmem:[#allocation2 + $0x50] sm:$0xff] }
 0x1b9   : > { %v1040_v47 = vadd.f32 %v886_v45, %v430_v43  ;;  %v665_v48 = vpop.f32.mrb[4].mxu0 }
 0x1ba   : > { %v890_v50 = vpop.f32.mrb[4].mxu1  ;;  %v667_v51 = vpop.f32.mrb[5].mxu0 }
 0x1bb   : > { %1072 = vst [vmem:[#allocation2 + $0x8] sm:$0xff] %v1040_v47  ;;  %v891_v52 = vadd.f32 %v890_v50, %v665_v48  ;;  %v892_v53 = vpop.f32.mrb[5].mxu1  ;;  %v440_v48 = vld [vmem:[#allocation2 + $0x58] sm:$0xff] }
 0x1bd   : > { %v1041_v54 = vadd.f32 %v891_v52, %v431_v49  ;;  %v670_v55 = vpop.f32.mrb[6].mxu0 }
 0x1be   : > { %v895_v57 = vpop.f32.mrb[6].mxu1  ;;  %v672_v58 = vpop.f32.mrb[7].mxu0 }
 0x1bf   : > { %1073 = vst [vmem:[#allocation2 + $0x10] sm:$0xff] %v1041_v54  ;;  %v896_v59 = vadd.f32 %v895_v57, %v670_v55  ;;  %v897_v60 = vpop.f32.mrb[7].mxu1  ;;  %v441_v55 = vld [vmem:[#allocation2 + $0x60] sm:$0xff] }
 0x1c1   : > { %v1042_v61 = vadd.f32 %v896_v59, %v432_v56  ;;  %v675_v62 = vpop.f32.mrb[8].mxu0 }
 0x1c2   : > { %v900_v0 = vpop.f32.mrb[8].mxu1  ;;  %v677_v1 = vpop.f32.mrb[9].mxu0 }
 0x1c3   : > { %1074 = vst [vmem:[#allocation2 + $0x18] sm:$0xff] %v1042_v61  ;;  %v901_v2 = vadd.f32 %v900_v0, %v675_v62  ;;  %v902_v4 = vpop.f32.mrb[9].mxu1  ;;  %v442_v62 = vld [vmem:[#allocation2 + $0x68] sm:$0xff] }
 0x1c5   : > { %v1043_v5 = vadd.f32 %v901_v2, %v433_v63  ;;  %v680_v6 = vpop.f32.mrb[10].mxu0 }
 0x1c6   : > { %v905_v8 = vpop.f32.mrb[10].mxu1  ;;  %v682_v9 = vpop.f32.mrb[11].mxu0 }
 0x1c7   : > { %1075 = vst [vmem:[#allocation2 + $0x20] sm:$0xff] %v1043_v5  ;;  %v906_v10 = vadd.f32 %v905_v8, %v680_v6  ;;  %v907_v11 = vpop.f32.mrb[11].mxu1  ;;  %v443_v6 = vld [vmem:[#allocation2 + $0x70] sm:$0xff] }
 0x1c9   : > { %v1044_v12 = vadd.f32 %v906_v10, %v434_v7  ;;  %v685_v13 = vpop.f32.mrb[12].mxu0 }
 0x1ca   : > { %v910_v15 = vpop.f32.mrb[12].mxu1  ;;  %v687_v16 = vpop.f32.mrb[13].mxu0 }
 0x1cb   : > { %1076 = vst [vmem:[#allocation2 + $0x28] sm:$0xff] %v1044_v12  ;;  %v911_v17 = vadd.f32 %v910_v15, %v685_v13  ;;  %v912_v18 = vpop.f32.mrb[13].mxu1  ;;  %v444_v13 = vld [vmem:[#allocation2 + $0x78] sm:$0xff] }
 0x1cd   : > { %v1045_v19 = vadd.f32 %v911_v17, %v435_v14  ;;  %v690_v20 = vpop.f32.mrb[14].mxu0 }
 0x1ce   : > { %v915_v22 = vpop.f32.mrb[14].mxu1  ;;  %v692_v23 = vpop.f32.mrb[15].mxu0 }
 0x1cf   : > { %1077 = vst [vmem:[#allocation2 + $0x30] sm:$0xff] %v1045_v19  ;;  %v916_v24 = vadd.f32 %v915_v22, %v690_v20  ;;  %v917_v25 = vpop.f32.mrb[15].mxu1  ;;  %v445_v20 = vld [vmem:[#allocation2 + $0x80] sm:$0xff] }
 0x1d1   : > { %v1046_v26 = vadd.f32 %v916_v24, %v436_v21  ;;  %v695_v27 = vpop.f32.mrb[16].mxu0 }
 0x1d2   : > { %v920_v29 = vpop.f32.mrb[16].mxu1  ;;  %v697_v30 = vpop.f32.mrb[17].mxu0 }
 0x1d3   : > { %1078 = vst [vmem:[#allocation2 + $0x38] sm:$0xff] %v1046_v26  ;;  %v921_v31 = vadd.f32 %v920_v29, %v695_v27  ;;  %v922_v32 = vpop.f32.mrb[17].mxu1  ;;  %v446_v27 = vld [vmem:[#allocation2 + $0x88] sm:$0xff] }
 0x1d5   : > { %v1047_v33 = vadd.f32 %v921_v31, %v437_v28  ;;  %v700_v34 = vpop.f32.mrb[18].mxu0 }
 0x1d6   : > { %v925_v36 = vpop.f32.mrb[18].mxu1  ;;  %v702_v37 = vpop.f32.mrb[19].mxu0 }
 0x1d7   : > { %1079 = vst [vmem:[#allocation2 + $0x40] sm:$0xff] %v1047_v33  ;;  %v926_v38 = vadd.f32 %v925_v36, %v700_v34  ;;  %v927_v39 = vpop.f32.mrb[19].mxu1  ;;  %v447_v34 = vld [vmem:[#allocation2 + $0x90] sm:$0xff] }
 0x1d9   : > { %v1048_v40 = vadd.f32 %v926_v38, %v438_v35  ;;  %v705_v41 = vpop.f32.mrb[20].mxu0 }
 0x1da   : > { %v930_v43 = vpop.f32.mrb[20].mxu1  ;;  %v707_v3 = vpop.f32.mrb[21].mxu0 }
 0x1db   : > { %1080 = vst [vmem:[#allocation2 + $0x48] sm:$0xff] %v1048_v40  ;;  %v931_v44 = vadd.f32 %v930_v43, %v705_v41  ;;  %v932_v45 = vpop.f32.mrb[21].mxu1  ;;  %v448_v41 = vld [vmem:[#allocation2 + $0x98] sm:$0xff] }
 0x1dd   : > { %v1049_v46 = vadd.f32 %v931_v44, %v439_v42  ;;  %v710_v47 = vpop.f32.mrb[22].mxu0 }
 0x1de   : > { %v935_v49 = vpop.f32.mrb[22].mxu1  ;;  %v712_v50 = vpop.f32.mrb[23].mxu0 }
 0x1df   : > { %1081 = vst [vmem:[#allocation2 + $0x50] sm:$0xff] %v1049_v46  ;;  %v936_v51 = vadd.f32 %v935_v49, %v710_v47  ;;  %v937_v52 = vpop.f32.mrb[23].mxu1  ;;  %v449_v47 = vld [vmem:[#allocation2 + $0xa0] sm:$0xff] }
 0x1e1   : > { %v1050_v53 = vadd.f32 %v936_v51, %v440_v48  ;;  %v715_v54 = vpop.f32.mrb[24].mxu0 }
 0x1e2   : > { %v940_v56 = vpop.f32.mrb[24].mxu1  ;;  %v717_v57 = vpop.f32.mrb[25].mxu0 }
 0x1e3   : > { %1082 = vst [vmem:[#allocation2 + $0x58] sm:$0xff] %v1050_v53  ;;  %v941_v58 = vadd.f32 %v940_v56, %v715_v54  ;;  %v942_v59 = vpop.f32.mrb[25].mxu1  ;;  %v450_v54 = vld [vmem:[#allocation2 + $0xa8] sm:$0xff] }
 0x1e5   : > { %v1051_v60 = vadd.f32 %v941_v58, %v441_v55  ;;  %v720_v61 = vpop.f32.mrb[26].mxu0 }
 0x1e6   : > { %v945_v63 = vpop.f32.mrb[26].mxu1  ;;  %v722_v0 = vpop.f32.mrb[27].mxu0 }
 0x1e7   : > { %1083 = vst [vmem:[#allocation2 + $0x60] sm:$0xff] %v1051_v60  ;;  %v946_v1 = vadd.f32 %v945_v63, %v720_v61  ;;  %v947_v2 = vpop.f32.mrb[27].mxu1  ;;  %v451_v61 = vld [vmem:[#allocation2 + $0xb0] sm:$0xff] }
 0x1e9   : > { %v1052_v4 = vadd.f32 %v946_v1, %v442_v62  ;;  %v725_v5 = vpop.f32.mrb[28].mxu0 }
 0x1ea   : > { %v950_v7 = vpop.f32.mrb[28].mxu1  ;;  %v727_v8 = vpop.f32.mrb[29].mxu0 }
 0x1eb   : > { %1084 = vst [vmem:[#allocation2 + $0x68] sm:$0xff] %v1052_v4  ;;  %v951_v9 = vadd.f32 %v950_v7, %v725_v5  ;;  %v952_v10 = vpop.f32.mrb[29].mxu1  ;;  %v452_v5 = vld [vmem:[#allocation2 + $0xb8] sm:$0xff] }
 0x1ed   : > { %v1053_v11 = vadd.f32 %v951_v9, %v443_v6  ;;  %v730_v12 = vpop.f32.mrb[30].mxu0 }
 0x1ee   : > { %v955_v14 = vpop.f32.mrb[30].mxu1  ;;  %v732_v15 = vpop.f32.mrb[31].mxu0 }
 0x1ef   : > { %1085 = vst [vmem:[#allocation2 + $0x70] sm:$0xff] %v1053_v11  ;;  %v956_v16 = vadd.f32 %v955_v14, %v730_v12  ;;  %v957_v17 = vpop.f32.mrb[31].mxu1  ;;  %v453_v12 = vld [vmem:[#allocation2 + $0xc0] sm:$0xff] }
 0x1f1   : > { %v1054_v18 = vadd.f32 %v956_v16, %v444_v13  ;;  %v735_v19 = vpop.f32.mrb[32].mxu0 }
 0x1f2   : > { %v960_v21 = vpop.f32.mrb[32].mxu1  ;;  %v737_v22 = vpop.f32.mrb[33].mxu0 }
 0x1f3   : > { %1086 = vst [vmem:[#allocation2 + $0x78] sm:$0xff] %v1054_v18  ;;  %v961_v23 = vadd.f32 %v960_v21, %v735_v19  ;;  %v962_v24 = vpop.f32.mrb[33].mxu1  ;;  %v454_v19 = vld [vmem:[#allocation2 + $0xc8] sm:$0xff] }
 0x1f5   : > { %v1055_v25 = vadd.f32 %v961_v23, %v445_v20  ;;  %v740_v26 = vpop.f32.mrb[34].mxu0 }
 0x1f6   : > { %v965_v28 = vpop.f32.mrb[34].mxu1  ;;  %v742_v29 = vpop.f32.mrb[35].mxu0 }
 0x1f7   : > { %1087 = vst [vmem:[#allocation2 + $0x80] sm:$0xff] %v1055_v25  ;;  %v966_v30 = vadd.f32 %v965_v28, %v740_v26  ;;  %v967_v31 = vpop.f32.mrb[35].mxu1  ;;  %v455_v26 = vld [vmem:[#allocation2 + $0xd0] sm:$0xff] }
 0x1f9   : > { %v1056_v32 = vadd.f32 %v966_v30, %v446_v27  ;;  %v745_v33 = vpop.f32.mrb[36].mxu0 }
 0x1fa   : > { %v970_v35 = vpop.f32.mrb[36].mxu1  ;;  %v747_v36 = vpop.f32.mrb[37].mxu0 }
 0x1fb   : > { %1088 = vst [vmem:[#allocation2 + $0x88] sm:$0xff] %v1056_v32  ;;  %v971_v37 = vadd.f32 %v970_v35, %v745_v33  ;;  %v972_v38 = vpop.f32.mrb[37].mxu1  ;;  %v456_v33 = vld [vmem:[#allocation2 + $0xd8] sm:$0xff] }
 0x1fd   : > { %v1057_v39 = vadd.f32 %v971_v37, %v447_v34  ;;  %v750_v40 = vpop.f32.mrb[38].mxu0 }
 0x1fe   : > { %v975_v42 = vpop.f32.mrb[38].mxu1  ;;  %v752_v43 = vpop.f32.mrb[39].mxu0 }
 0x1ff   : > { %1089 = vst [vmem:[#allocation2 + $0x90] sm:$0xff] %v1057_v39  ;;  %v976_v3 = vadd.f32 %v975_v42, %v750_v40  ;;  %v977_v44 = vpop.f32.mrb[39].mxu1  ;;  %v457_v40 = vld [vmem:[#allocation2 + $0xe0] sm:$0xff] }
 0x201   : > { %v1058_v45 = vadd.f32 %v976_v3, %v448_v41  ;;  %v755_v46 = vpop.f32.mrb[40].mxu0 }
 0x202   : > { %v980_v48 = vpop.f32.mrb[40].mxu1  ;;  %v757_v49 = vpop.f32.mrb[41].mxu0 }
 0x203   : > { %1090 = vst [vmem:[#allocation2 + $0x98] sm:$0xff] %v1058_v45  ;;  %v981_v50 = vadd.f32 %v980_v48, %v755_v46  ;;  %v982_v51 = vpop.f32.mrb[41].mxu1  ;;  %v458_v46 = vld [vmem:[#allocation2 + $0xe8] sm:$0xff] }
 0x205   : > { %v1059_v52 = vadd.f32 %v981_v50, %v449_v47  ;;  %v760_v53 = vpop.f32.mrb[42].mxu0 }
 0x206   : > { %v985_v55 = vpop.f32.mrb[42].mxu1  ;;  %v762_v56 = vpop.f32.mrb[43].mxu0 }
 0x207   : > { %1091 = vst [vmem:[#allocation2 + $0xa0] sm:$0xff] %v1059_v52  ;;  %v986_v57 = vadd.f32 %v985_v55, %v760_v53  ;;  %v987_v58 = vpop.f32.mrb[43].mxu1  ;;  %v459_v53 = vld [vmem:[#allocation2 + $0xf0] sm:$0xff] }
 0x209   : > { %v1060_v59 = vadd.f32 %v986_v57, %v450_v54  ;;  %v765_v60 = vpop.f32.mrb[44].mxu0 }
 0x20a   : > { %v990_v62 = vpop.f32.mrb[44].mxu1  ;;  %v767_v63 = vpop.f32.mrb[45].mxu0 }
 0x20b   : > { %1092 = vst [vmem:[#allocation2 + $0xa8] sm:$0xff] %v1060_v59  ;;  %v991_v0 = vadd.f32 %v990_v62, %v765_v60  ;;  %v992_v1 = vpop.f32.mrb[45].mxu1  ;;  %v460_v60 = vld [vmem:[#allocation2 + $0xf8] sm:$0xff] }
 0x20d   : > { %v1061_v2 = vadd.f32 %v991_v0, %v451_v61  ;;  %v770_v4 = vpop.f32.mrb[46].mxu0 }
 0x20e   : > { %v995_v6 = vpop.f32.mrb[46].mxu1  ;;  %v772_v7 = vpop.f32.mrb[47].mxu0 }
 0x20f   : > { %1093 = vst [vmem:[#allocation2 + $0xb0] sm:$0xff] %v1061_v2  ;;  %v996_v8 = vadd.f32 %v995_v6, %v770_v4  ;;  %v997_v9 = vpop.f32.mrb[47].mxu1 }
 0x211   : > { %v1062_v10 = vadd.f32 %v996_v8, %v452_v5  ;;  %v775_v11 = vpop.f32.mrb[48].mxu0 }
 0x212   : > { %v1000_v13 = vpop.f32.mrb[48].mxu1  ;;  %v777_v14 = vpop.f32.mrb[49].mxu0 }
 0x213   : > { %1094 = vst [vmem:[#allocation2 + $0xb8] sm:$0xff] %v1062_v10  ;;  %v1001_v15 = vadd.f32 %v1000_v13, %v775_v11  ;;  %v1002_v16 = vpop.f32.mrb[49].mxu1 }
 0x215   : > { %v1063_v17 = vadd.f32 %v1001_v15, %v453_v12  ;;  %v780_v18 = vpop.f32.mrb[50].mxu0 }
 0x216   : > { %v1005_v20 = vpop.f32.mrb[50].mxu1  ;;  %v782_v21 = vpop.f32.mrb[51].mxu0 }
 0x217   : > { %1095 = vst [vmem:[#allocation2 + $0xc0] sm:$0xff] %v1063_v17  ;;  %v1006_v22 = vadd.f32 %v1005_v20, %v780_v18  ;;  %v1007_v23 = vpop.f32.mrb[51].mxu1 }
 0x219   : > { %v1064_v24 = vadd.f32 %v1006_v22, %v454_v19  ;;  %v785_v25 = vpop.f32.mrb[52].mxu0 }
 0x21a   : > { %v1010_v27 = vpop.f32.mrb[52].mxu1  ;;  %v787_v28 = vpop.f32.mrb[53].mxu0 }
 0x21b   : > { %1096 = vst [vmem:[#allocation2 + $0xc8] sm:$0xff] %v1064_v24  ;;  %v1011_v29 = vadd.f32 %v1010_v27, %v785_v25  ;;  %v1012_v30 = vpop.f32.mrb[53].mxu1 }
 0x21d   : > { %v1065_v31 = vadd.f32 %v1011_v29, %v455_v26  ;;  %v790_v32 = vpop.f32.mrb[54].mxu0 }
 0x21e   : > { %v1015_v34 = vpop.f32.mrb[54].mxu1  ;;  %v792_v35 = vpop.f32.mrb[55].mxu0 }
 0x21f   : > { %1097 = vst [vmem:[#allocation2 + $0xd0] sm:$0xff] %v1065_v31  ;;  %v1016_v36 = vadd.f32 %v1015_v34, %v790_v32  ;;  %v1017_v37 = vpop.f32.mrb[55].mxu1 }
 0x221   : > { %v1066_v38 = vadd.f32 %v1016_v36, %v456_v33  ;;  %v795_v39 = vpop.f32.mrb[56].mxu0 }
 0x222   : > { %v1020_v41 = vpop.f32.mrb[56].mxu1  ;;  %v797_v42 = vpop.f32.mrb[57].mxu0 }
 0x223   : > { %1098 = vst [vmem:[#allocation2 + $0xd8] sm:$0xff] %v1066_v38  ;;  %v1021_v43 = vadd.f32 %v1020_v41, %v795_v39  ;;  %v1022_v3 = vpop.f32.mrb[57].mxu1 }
 0x225   : > { %v1067_v44 = vadd.f32 %v1021_v43, %v457_v40  ;;  %v800_v45 = vpop.f32.mrb[58].mxu0 }
 0x226   : > { %v1025_v47 = vpop.f32.mrb[58].mxu1  ;;  %v802_v48 = vpop.f32.mrb[59].mxu0 }
 0x227   : > { %1099 = vst [vmem:[#allocation2 + $0xe0] sm:$0xff] %v1067_v44  ;;  %v1026_v49 = vadd.f32 %v1025_v47, %v800_v45  ;;  %v1027_v50 = vpop.f32.mrb[59].mxu1 }
 0x229   : > { %v1068_v51 = vadd.f32 %v1026_v49, %v458_v46  ;;  %v805_v52 = vpop.f32.mrb[60].mxu0 }
 0x22a   : > { %v1030_v54 = vpop.f32.mrb[60].mxu1  ;;  %v807_v55 = vpop.f32.mrb[61].mxu0 }
 0x22b   : > { %1100 = vst [vmem:[#allocation2 + $0xe8] sm:$0xff] %v1068_v51  ;;  %v1031_v56 = vadd.f32 %v1030_v54, %v805_v52  ;;  %v1032_v57 = vpop.f32.mrb[61].mxu1 }
 0x22d   : > { %v1069_v58 = vadd.f32 %v1031_v56, %v459_v53  ;;  %v810_v59 = vpop.f32.mrb[62].mxu0 }
 0x22e   : > { %v1035_v61 = vpop.f32.mrb[62].mxu1  ;;  %v812_v62 = vpop.f32.mrb[63].mxu0 }
 0x22f   : > { %1101 = vst [vmem:[#allocation2 + $0xf0] sm:$0xff] %v1069_v58  ;;  %v1036_v63 = vadd.f32 %v1035_v61, %v810_v59  ;;  %v1037_v0 = vpop.f32.mrb[63].mxu1 }
 0x231   : > { %v1070_v1 = vadd.f32 %v1036_v63, %v460_v60 }
 0x233   : > { %1102 = vst [vmem:[#allocation2 + $0xf8] sm:$0xff] %v1070_v1 }
 0x234 PF: > { %v1138_v2 = vld [vmem:[#allocation9] sm:$0xff]  ;;  %v1139_v4 = vld [vmem:[#allocation9 + $0x8] sm:$0xff]  ;;  %v1140_v5 = vld [vmem:[#allocation9 + $0x10] sm:$0xff]  ;;  %v2383_v8 = vmov 0   ;;  %s1790_s5 = sshll.u32 %s2363_s15, 12  ;;  %s1656_s1 = sshll.u32 %s2635_s0, 4  ;;  %s3008_s1 = int_to_ptr.vmem [resolvable:$true] %s1656_s1 }
 0x235   : > { %v2015_v6 = vpack.c.bf16 %v1139_v4, %v1138_v2  ;;  %v1141_v7 = vld [vmem:[#allocation9 + $0x18] sm:$0xff]  ;;  %2176 = vset.pattern.permute.xlu1 %v2383_v8  ;;  %2175 = vset.pattern.permute.xlu0 %v2383_v8  ;;  %v1142_v10 = vld [vmem:[#allocation9 + $0x20] sm:$0xff]  ;;  %v1143_v11 = vld [vmem:[#allocation9 + $0x28] sm:$0xff]  ;;  %s3006_s24 = scalar_lea.hbm %s3078_s7, %s1790_s5  ;;  %s3016_s25 = scalar_lea.sflag [#allocation8], %s306_s17 }
 0x236   : > { %v2019_v9 = vpack.c.bf16 %v1141_v7, %v1140_v5  ;;  %v1156_v12 = vld [vmem:[%s2632_s26 + $0x10] sm:$0xff]  ;;  %v1154_v13 = vld [vmem:[%s2632_s26] sm:$0xff]  ;;  %v2023_v14 = vpack.c.bf16 %v1143_v11, %v1142_v10  ;;  %v1145_v16 = vld [vmem:[#allocation9 + $0x38] sm:$0xff]  ;;  %s2259_s30 = scalar_lea.vmem %s3008_s1, 4096  ;;  %p3110_p5 = scmp.ne.s32.totalorder %s3097_s22, 0 }
 0x237   : > { %2016 = vmatprep.subr.bf16.mxu0 %v2015_v6  ;;  %2047 = vmatprep.subr.bf16.mxu1 %v2015_v6  ;;  %v1144_v15 = vld [vmem:[#allocation9 + $0x30] sm:$0xff]  ;;  %v1157_v17 = vld [vmem:[%s2632_s26 + $0x18] sm:$0xff]  ;;  %v1155_v18 = vld [vmem:[%s2632_s26 + $0x8] sm:$0xff]  ;;  %p2260_p3 = scmp.ne.s32.totalorder %s3008_s1, %s2259_s30  ;;  %s2384_s20 = smov [#allocation11]  }
 0x238   : > { %2018 = vmatpush3.bf16.msra.mxu0 %v2015_v6  ;;  %2055 = vmatpush3.bf16.msra.mxu1 %v2015_v6  ;;  %v1106_v19 = vld [vmem:[#allocation2] sm:$0xff]  ;;  %v2027_v21 = vpack.c.bf16 %v1145_v16, %v1144_v15  ;;  %v1147_v23 = vld [vmem:[#allocation9 + $0x48] sm:$0xff]  ;;  %v1148_v27 = vld [vmem:[#allocation9 + $0x50] sm:$0xff]  ;;  %s2263_s21 = sshll.u32 %s2384_s20, 4  ;;  %s2264_s21 = int_to_ptr.vmem [resolvable:$false] %s2263_s21 }
 0x239   : > { %2020 = vmatprep.subr.bf16.mxu0 %v2019_v9  ;;  %2048 = vmatprep.subr.bf16.mxu1 %v2019_v9  ;;  %v1122_v20 = vld [vmem:[#allocation2 + $0x80] sm:$0xff]  ;;  %v1159_v24 = vld [vmem:[%s2632_s26 + $0x28] sm:$0xff]  ;;  %v1149_v28 = vld [vmem:[#allocation9 + $0x58] sm:$0xff]  ;;  %p2261_p7 = pnand %p2260_p3, %p3110_p5  ;;  %s2265_s27 = scalar_lea.vmem %s2264_s21, 8192 }
 0x23a   : > { %1199 = vperm.xlu1 %2176, %v1156_v12   ;;  %1189 = vperm.xlu0 %2175, %v1154_v13   ;;  %v1146_v22 = vld [vmem:[#allocation9 + $0x40] sm:$0xff]  ;;  %v1161_v29 = vld [vmem:[%s2632_s26 + $0x38] sm:$0xff]  ;;  %v1160_v30 = vld [vmem:[%s2632_s26 + $0x30] sm:$0xff]  ;;  %v2035_v31 = vpack.c.bf16 %v1149_v28, %v1148_v27  ;;  %p2266_p12 = scmp.lt.s32.totalorder %s3008_s1, %s2264_s21  ;;  %p2267_p0 = scmp.lt.s32.totalorder %s2265_s27, %s2259_s30 }
 0x23b   : > { %v1158_v25 = vld [vmem:[%s2632_s26 + $0x20] sm:$0xff]  ;;  %1871 = vmatprep.mubr.f32.mxu0 %v1106_v19  ;;  %1895 = vmatprep.mubr.f32.mxu1 %v1122_v20  ;;  %v2031_v26 = vpack.c.bf16 %v1147_v23, %v1146_v22  ;;  %v1151_v33 = vld [vmem:[#allocation9 + $0x68] sm:$0xff]  ;;  %v1152_v37 = vld [vmem:[#allocation9 + $0x70] sm:$0xff]  ;;  %p2262_p9 = pneg %p2261_p7 }
 0x23c   : > { %2022 = vmatpush3.bf16.msra.mxu0 %v2019_v9  ;;  %2056 = vmatpush3.bf16.msra.mxu1 %v2019_v9  ;;  %v1150_v32 = vld [vmem:[#allocation9 + $0x60] sm:$0xff]  ;;  %v1163_v34 = vld [vmem:[%s2632_s26 + $0x48] sm:$0xff]  ;;  %v1153_v38 = vld [vmem:[#allocation9 + $0x78] sm:$0xff]  ;;  %p2268_p2 = por %p2267_p0, %p2266_p12 }
 0x23d   : > { %2024 = vmatprep.subr.bf16.mxu0 %v2023_v14  ;;  %2049 = vmatprep.subr.bf16.mxu1 %v2023_v14  ;;  %v1162_v35 = vld [vmem:[%s2632_s26 + $0x40] sm:$0xff]  ;;  %v2039_v36 = vpack.c.bf16 %v1151_v33, %v1150_v32  ;;  %v1165_v39 = vld [vmem:[%s2632_s26 + $0x58] sm:$0xff]  ;;  %v1164_v40 = vld [vmem:[%s2632_s26 + $0x50] sm:$0xff]  ;;  %v2043_v41 = vpack.c.bf16 %v1153_v38, %v1152_v37 }
 0x23e   : > { %1204 = vperm.xlu1 %2176, %v1157_v17   ;;  %1194 = vperm.xlu0 %2175, %v1155_v18   ;;  %v1167_v42 = vld [vmem:[%s2632_s26 + $0x68] sm:$0xff]  ;;  %v1166_v43 = vld [vmem:[%s2632_s26 + $0x60] sm:$0xff]  ;;  %v1169_v3 = vld [vmem:[%s2632_s26 + $0x78] sm:$0xff]  ;;  %p2269_p6 = pnand %p2268_p2, %p2262_p9 }
 0x23f   : > { %v1168_v44 = vld [vmem:[%s2632_s26 + $0x70] sm:$0xff]  ;;  %v1107_v45 = vld [vmem:[#allocation2 + $0x8] sm:$0xff]  ;;  %v1170_v50 = vld [vmem:[%s2632_s26 + $0x80] sm:$0xff] }
 0x240   : > { %2026 = vmatpush3.bf16.msra.mxu0 %v2023_v14  ;;  %2057 = vmatpush3.bf16.msra.mxu1 %v2023_v14  ;;  %v1123_v46 = vld [vmem:[#allocation2 + $0x88] sm:$0xff]  ;;  %v1108_v47 = vld [vmem:[#allocation2 + $0x10] sm:$0xff]  ;;  %v1109_v51 = vld [vmem:[#allocation2 + $0x18] sm:$0xff] }
 0x241   : > { %2028 = vmatprep.subr.bf16.mxu0 %v2027_v21  ;;  %2050 = vmatprep.subr.bf16.mxu1 %v2027_v21  ;;  %v1124_v48 = vld [vmem:[#allocation2 + $0x90] sm:$0xff]  ;;  %v1171_v49 = vld [vmem:[%s2632_s26 + $0x88] sm:$0xff]  ;;  %v1125_v52 = vld [vmem:[#allocation2 + $0x98] sm:$0xff] }
 0x242   : > { %1214 = vperm.xlu1 %2176, %v1159_v24   ;;  %1209 = vperm.xlu0 %2175, %v1158_v25   ;;  %v1110_v53 = vld [vmem:[#allocation2 + $0x20] sm:$0xff]  ;;  %v1173_v55 = vld [vmem:[%s2632_s26 + $0x98] sm:$0xff]  ;;  %v1172_v56 = vld [vmem:[%s2632_s26 + $0x90] sm:$0xff] }
 0x243   : > { %v1126_v54 = vld [vmem:[#allocation2 + $0xa0] sm:$0xff]  ;;  %v1111_v57 = vld [vmem:[#allocation2 + $0x28] sm:$0xff]  ;;  %v1112_v59 = vld [vmem:[#allocation2 + $0x30] sm:$0xff] }
 0x244   : > { %2030 = vmatpush3.bf16.msra.mxu0 %v2027_v21  ;;  %2058 = vmatpush3.bf16.msra.mxu1 %v2027_v21  ;;  %v1127_v58 = vld [vmem:[#allocation2 + $0xa8] sm:$0xff]  ;;  %v1128_v60 = vld [vmem:[#allocation2 + $0xb0] sm:$0xff]  ;;  %v1174_v62 = vld [vmem:[%s2632_s26 + $0xa0] sm:$0xff] }
 0x245   : > { %2032 = vmatprep.subr.bf16.mxu0 %v2031_v26  ;;  %2051 = vmatprep.subr.bf16.mxu1 %v2031_v26  ;;  %v1175_v61 = vld [vmem:[%s2632_s26 + $0xa8] sm:$0xff]  ;;  %v1113_v63 = vld [vmem:[#allocation2 + $0x38] sm:$0xff]  ;;  %v1114_v1 = vld [vmem:[#allocation2 + $0x40] sm:$0xff] }
 0x246   : > { %1224 = vperm.xlu1 %2176, %v1161_v29   ;;  %1219 = vperm.xlu0 %2175, %v1160_v30   ;;  %v1129_v0 = vld [vmem:[#allocation2 + $0xb8] sm:$0xff]  ;;  %v1130_v2 = vld [vmem:[#allocation2 + $0xc0] sm:$0xff]  ;;  %v1176_v5 = vld [vmem:[%s2632_s26 + $0xb0] sm:$0xff] }
 0x247   : > { %v1177_v4 = vld [vmem:[%s2632_s26 + $0xb8] sm:$0xff]  ;;  %v1115_v6 = vld [vmem:[#allocation2 + $0x48] sm:$0xff]  ;;  %v1116_v8 = vld [vmem:[#allocation2 + $0x50] sm:$0xff] }
 0x248   : > { %2034 = vmatpush3.bf16.msra.mxu0 %v2031_v26  ;;  %2059 = vmatpush3.bf16.msra.mxu1 %v2031_v26  ;;  %v1131_v7 = vld [vmem:[#allocation2 + $0xc8] sm:$0xff]  ;;  %v1132_v9 = vld [vmem:[#allocation2 + $0xd0] sm:$0xff]  ;;  %v1178_v11 = vld [vmem:[%s2632_s26 + $0xc0] sm:$0xff] }
 0x249   : > { %2036 = vmatprep.subr.bf16.mxu0 %v2035_v31  ;;  %2052 = vmatprep.subr.bf16.mxu1 %v2035_v31  ;;  %v1179_v10 = vld [vmem:[%s2632_s26 + $0xc8] sm:$0xff]  ;;  %v1117_v12 = vld [vmem:[#allocation2 + $0x58] sm:$0xff]  ;;  %v1118_v14 = vld [vmem:[#allocation2 + $0x60] sm:$0xff] }
 0x24a   : > { %1234 = vperm.xlu1 %2176, %v1163_v34   ;;  %1229 = vperm.xlu0 %2175, %v1162_v35   ;;  %v1133_v13 = vld [vmem:[#allocation2 + $0xd8] sm:$0xff]  ;;  %v1134_v15 = vld [vmem:[#allocation2 + $0xe0] sm:$0xff]  ;;  %v1180_v17 = vld [vmem:[%s2632_s26 + $0xd0] sm:$0xff] }
 0x24b   : > { %v1181_v16 = vld [vmem:[%s2632_s26 + $0xd8] sm:$0xff]  ;;  %v1119_v18 = vld [vmem:[#allocation2 + $0x68] sm:$0xff]  ;;  %v1120_v20 = vld [vmem:[#allocation2 + $0x70] sm:$0xff] }
 0x24c   : > { %2038 = vmatpush3.bf16.msra.mxu0 %v2035_v31  ;;  %2060 = vmatpush3.bf16.msra.mxu1 %v2035_v31  ;;  %v1135_v19 = vld [vmem:[#allocation2 + $0xe8] sm:$0xff]  ;;  %v1136_v21 = vld [vmem:[#allocation2 + $0xf0] sm:$0xff]  ;;  %v1182_v23 = vld [vmem:[%s2632_s26 + $0xe0] sm:$0xff] }
 0x24d   : > { %2040 = vmatprep.subr.bf16.mxu0 %v2039_v36  ;;  %2053 = vmatprep.subr.bf16.mxu1 %v2039_v36  ;;  %v1183_v22 = vld [vmem:[%s2632_s26 + $0xe8] sm:$0xff]  ;;  %v1121_v24 = vld [vmem:[#allocation2 + $0x78] sm:$0xff]  ;;  %v1184_v27 = vld [vmem:[%s2632_s26 + $0xf0] sm:$0xff] }
 0x24e   : > { %1244 = vperm.xlu1 %2176, %v1165_v39   ;;  %1239 = vperm.xlu0 %2175, %v1164_v40   ;;  %v1137_v25 = vld [vmem:[#allocation2 + $0xf8] sm:$0xff] }
 0x24f   : > { %v1185_v26 = vld [vmem:[%s2632_s26 + $0xf8] sm:$0xff] }
 0x250   : > { %2042 = vmatpush3.bf16.msra.mxu0 %v2039_v36  ;;  %2061 = vmatpush3.bf16.msra.mxu1 %v2039_v36 }
 0x251   : > { %2044 = vmatprep.subr.bf16.mxu0 %v2043_v41  ;;  %2054 = vmatprep.subr.bf16.mxu1 %v2043_v41 }
 0x252   : > { %1254 = vperm.xlu1 %2176, %v1167_v42   ;;  %1249 = vperm.xlu0 %2175, %v1166_v43  }
 0x254   : > { %2046 = vmatpush3.bf16.msra.mxu0 %v2043_v41  ;;  %2062 = vmatpush3.bf16.msra.mxu1 %v2043_v41 }
 0x256   : > { %1264 = vperm.xlu1 %2176, %v1169_v3   ;;  %1259 = vperm.xlu0 %2175, %v1168_v44  }
 0x257   : > { %1872 = vmatmul.mubr.f32.vlgmr.msra.gmra.mrb[0].mxu0 %v1107_v45  ;;  %1896 = vmatmul.mubr.f32.vlgmr.msra.gmra.mrb[0].mxu1 %v1123_v46 }
 0x258   : > { %1874 = vmatprep.mubr.f32.mxu0 %v1108_v47  ;;  %1898 = vmatprep.mubr.f32.mxu1 %v1124_v48 }
 0x25a   : > { %1274 = vperm.xlu1 %2176, %v1171_v49   ;;  %1269 = vperm.xlu0 %2175, %v1170_v50  }
 0x25b   : > { %1875 = vmatmul.mubr.f32.gmra.mrb[2].mxu0 %v1109_v51  ;;  %1899 = vmatmul.mubr.f32.gmra.mrb[2].mxu1 %v1125_v52  ;;  %v2923_v51 = vld [vmem:[%s3077_s6] ss:$0 sm:$0xff] }
 0x25c   : > { %1877 = vmatprep.mubr.f32.mxu0 %v1110_v53  ;;  %1901 = vmatprep.mubr.f32.mxu1 %v1126_v54 }
 0x25e   : > { %1284 = vperm.xlu1 %2176, %v1173_v55   ;;  %1279 = vperm.xlu0 %2175, %v1172_v56  }
 0x25f   : > { %1878 = vmatmul.mubr.f32.gmra.mrb[4].mxu0 %v1111_v57  ;;  %1902 = vmatmul.mubr.f32.gmra.mrb[4].mxu1 %v1127_v58 }
 0x260   : > { %1880 = vmatprep.mubr.f32.mxu0 %v1112_v59  ;;  %1904 = vmatprep.mubr.f32.mxu1 %v1128_v60 }
 0x262   : > { %1294 = vperm.xlu1 %2176, %v1175_v61   ;;  %1289 = vperm.xlu0 %2175, %v1174_v62  }
 0x263   : > { %1881 = vmatmul.mubr.f32.gmra.mrb[6].mxu0 %v1113_v63  ;;  %1905 = vmatmul.mubr.f32.gmra.mrb[6].mxu1 %v1129_v0 }
 0x264   : > { %1883 = vmatprep.mubr.f32.mxu0 %v1114_v1  ;;  %1907 = vmatprep.mubr.f32.mxu1 %v1130_v2 }
 0x266   : > { %1304 = vperm.xlu1 %2176, %v1177_v4   ;;  %1299 = vperm.xlu0 %2175, %v1176_v5  }
 0x267   : > { %1884 = vmatmul.mubr.f32.gmra.mrb[8].mxu0 %v1115_v6  ;;  %1908 = vmatmul.mubr.f32.gmra.mrb[8].mxu1 %v1131_v7 }
 0x268   : > { %1886 = vmatprep.mubr.f32.mxu0 %v1116_v8  ;;  %1910 = vmatprep.mubr.f32.mxu1 %v1132_v9 }
 0x26a   : > { %1314 = vperm.xlu1 %2176, %v1179_v10   ;;  %1309 = vperm.xlu0 %2175, %v1178_v11  }
 0x26b   : > { %1887 = vmatmul.mubr.f32.gmra.mrb[10].mxu0 %v1117_v12  ;;  %1911 = vmatmul.mubr.f32.gmra.mrb[10].mxu1 %v1133_v13 }
 0x26c   : > { %1889 = vmatprep.mubr.f32.mxu0 %v1118_v14  ;;  %1913 = vmatprep.mubr.f32.mxu1 %v1134_v15 }
 0x26e   : > { %1324 = vperm.xlu1 %2176, %v1181_v16   ;;  %1319 = vperm.xlu0 %2175, %v1180_v17  }
 0x26f   : > { %1890 = vmatmul.mubr.f32.gmra.mrb[12].mxu0 %v1119_v18  ;;  %1914 = vmatmul.mubr.f32.gmra.mrb[12].mxu1 %v1135_v19 }
 0x270   : > { %1892 = vmatprep.mubr.f32.mxu0 %v1120_v20  ;;  %1916 = vmatprep.mubr.f32.mxu1 %v1136_v21 }
 0x272   : > { %1334 = vperm.xlu1 %2176, %v1183_v22   ;;  %1329 = vperm.xlu0 %2175, %v1182_v23  }
 0x273   : > { %1893 = vmatmul.mubr.f32.gmra.mrb[14].mxu0 %v1121_v24  ;;  %1917 = vmatmul.mubr.f32.gmra.mrb[14].mxu1 %v1137_v25 }
 0x276   : > { %1344 = vperm.xlu1 %2176, %v1185_v26   ;;  %1339 = vperm.xlu0 %2175, %v1184_v27  }
 0x2b9   : > { %v1200_v28 = vpop.permute.xlu1 %1199  ;;  %v1190_v29 = vpop.permute.xlu0 %1189 }
 0x2ba   : > { %v1353_v56 = vmul.f32 %v2923_v51, %v1190_v29  ;;  %v1355_v5 = vmul.f32 %v2923_v51, %v1200_v28 }
 0x2bd   : > { %v1205_v30 = vpop.permute.xlu1 %1204  ;;  %v1195_v31 = vpop.permute.xlu0 %1194 }
 0x2be   : > { %v1354_v52 = vmul.f32 %v2923_v51, %v1195_v31  ;;  %v1356_v2 = vmul.f32 %v2923_v51, %v1205_v30 }
 0x2c1   : > { %v1215_v32 = vpop.permute.xlu1 %1214  ;;  %v1210_v33 = vpop.permute.xlu0 %1209 }
 0x2c2   : > { %v1358_v15 = vmul.f32 %v2923_v51, %v1215_v32  ;;  %v1357_v19 = vmul.f32 %v2923_v51, %v1210_v33 }
 0x2c5   : > { %v2900_v34 = vpop.permute.xlu1 %1224  ;;  %v2902_v35 = vpop.permute.xlu0 %1219 }
 0x2c6   : > { %v1360_v29 = vmul.f32 %v2923_v51, %v2900_v34  ;;  %v1359_v31 = vmul.f32 %v2923_v51, %v2902_v35 }
 0x2c9   : > { %v2904_v36 = vpop.permute.xlu1 %1234  ;;  %v2906_v37 = vpop.permute.xlu0 %1229 }
 0x2cd   : > { %v2908_v38 = vpop.permute.xlu1 %1244  ;;  %v2910_v39 = vpop.permute.xlu0 %1239 }
 0x2d1   : > { %v2912_v40 = vpop.permute.xlu1 %1254  ;;  %v2914_v41 = vpop.permute.xlu0 %1249 }
 0x2d5   : > { %v2916_v42 = vpop.permute.xlu1 %1264  ;;  %v2918_v43 = vpop.permute.xlu0 %1259 }
 0x2d9   : > { %v1275_v3 = vpop.permute.xlu1 %1274  ;;  %v1270_v44 = vpop.permute.xlu0 %1269 }
 0x2da   : > { %v1370_v53 = vmul.f32 %v2923_v51, %v1275_v3  ;;  %v1369_v57 = vmul.f32 %v2923_v51, %v1270_v44 }
 0x2dd   : > { %v1285_v45 = vpop.permute.xlu1 %1284  ;;  %v1280_v46 = vpop.permute.xlu0 %1279 }
 0x2de   : > { %v1372_v4 = vmul.f32 %v2923_v51, %v1285_v45  ;;  %v1371_v6 = vmul.f32 %v2923_v51, %v1280_v46 }
 0x2e1   : > { %v1295_v47 = vpop.permute.xlu1 %1294  ;;  %v1290_v48 = vpop.permute.xlu0 %1289 }
 0x2e2   : > { %v1374_v16 = vmul.f32 %v2923_v51, %v1295_v47  ;;  %v1373_v20 = vmul.f32 %v2923_v51, %v1290_v48 }
 0x2e5   : > { %v1305_v49 = vpop.permute.xlu1 %1304  ;;  %v1300_v50 = vpop.permute.xlu0 %1299 }
 0x2e6   : > { %v1376_v30 = vmul.f32 %v2923_v51, %v1305_v49  ;;  %v1375_v32 = vmul.f32 %v2923_v51, %v1300_v50  ;;  %v1362_v49 = vmul.f32 %v2923_v51, %v2904_v36 }
 0x2e9   : > { %v2927_v54 = vpop.permute.xlu1 %1314  ;;  %v2929_v55 = vpop.permute.xlu0 %1309 }
 0x2ea   : > { %v1378_v35 = vmul.f32 %v2923_v51, %v2927_v54 }
 0x2ed   : > { %v1325_v17 = vpop.permute.xlu1 %1324  ;;  %v1320_v18 = vpop.permute.xlu0 %1319 }
 0x2f1   : > { %v1335_v50 = vpop.permute.xlu1 %1334 }
 0x32a   : > { %v1873_v58 = vpop.f32.mrb[0].mxu0  ;;  %v1897_v59 = vpop.f32.mrb[0].mxu1 }
 0x32b   : > { %v1457_v60 = vadd.f32 %v1873_v58, %v1354_v52  ;;  %v1537_v61 = vadd.f32 %v1897_v59, %v1370_v53  ;;  %v1451_v62 = vpop.f32.mrb[1].mxu0  ;;  %v1531_v63 = vpop.f32.mrb[1].mxu1  ;;  %v1361_v53 = vmul.f32 %v2923_v51, %v2906_v37  ;;  %v1380_v37 = vmul.f32 %v2923_v51, %v1325_v17 }
 0x32c   : > { %v1452_v0 = vadd.f32 %v1451_v62, %v1353_v56  ;;  %v1532_v1 = vadd.f32 %v1531_v63, %v1369_v57  ;;  %v1330_v52 = vpop.permute.xlu0 %1329  ;;  %v1377_v56 = vmul.f32 %v2923_v51, %v2929_v55  ;;  %v1364_v63 = vmul.f32 %v2923_v51, %v2908_v38 }
 0x32d   : > { %1611 = vst [vmem:[%s2635_s0 + $0x8] sm:$0xff] %v1457_v60  ;;  %1627 = vst [vmem:[%s2635_s0 + $0x88] sm:$0xff] %v1537_v61  ;;  %v1363_v55 = vmul.f32 %v2923_v51, %v2910_v39  ;;  %v1382_v39 = vmul.f32 %v2923_v51, %v1335_v50 }
 0x32e   : > { %1610 = vst [vmem:[%s2635_s0] sm:$0xff] %v1452_v0  ;;  %1626 = vst [vmem:[%s2635_s0 + $0x80] sm:$0xff] %v1532_v1  ;;  %v1876_v7 = vpop.f32.mrb[2].mxu0  ;;  %v1900_v8 = vpop.f32.mrb[2].mxu1  ;;  %v1379_v0 = vmul.f32 %v2923_v51, %v1320_v18 }
 0x32f   : > { %v1467_v9 = vadd.f32 %v1876_v7, %v1356_v2  ;;  %v1547_v10 = vadd.f32 %v1900_v8, %v1372_v4  ;;  %v1461_v11 = vpop.f32.mrb[3].mxu0  ;;  %v1541_v12 = vpop.f32.mrb[3].mxu1 }
 0x330   : > { %v1462_v13 = vadd.f32 %v1461_v11, %v1355_v5  ;;  %v1542_v14 = vadd.f32 %v1541_v12, %v1371_v6  ;;  %v1340_v11 = vpop.permute.xlu0 %1339  ;;  %v1365_v12 = vmul.f32 %v2923_v51, %v2914_v41  ;;  %v1368_v41 = vmul.f32 %v2923_v51, %v2916_v42 }
 0x331   : > { %1613 = vst [vmem:[%s2635_s0 + $0x18] sm:$0xff] %v1467_v9  ;;  %1629 = vst [vmem:[%s2635_s0 + $0x98] sm:$0xff] %v1547_v10  ;;  %v1366_v9 = vmul.f32 %v2923_v51, %v2912_v40  ;;  %v1345_v10 = vpop.permute.xlu1 %1344 }
 0x332   : > { %1612 = vst [vmem:[%s2635_s0 + $0x10] sm:$0xff] %v1462_v13  ;;  %1628 = vst [vmem:[%s2635_s0 + $0x90] sm:$0xff] %v1542_v14  ;;  %v1879_v21 = vpop.f32.mrb[4].mxu0  ;;  %v1903_v22 = vpop.f32.mrb[4].mxu1  ;;  %v1381_v13 = vmul.f32 %v2923_v51, %v1330_v52 }
 0x333   : > { %v1477_v23 = vadd.f32 %v1879_v21, %v1358_v15  ;;  %v1557_v24 = vadd.f32 %v1903_v22, %v1374_v16  ;;  %v1471_v25 = vpop.f32.mrb[5].mxu0  ;;  %v1551_v26 = vpop.f32.mrb[5].mxu1  ;;  %v1384_v21 = vmul.f32 %v2923_v51, %v1345_v10  ;;  %v1367_v22 = vmul.f32 %v2923_v51, %v2918_v43 }
 0x334   : > { %v1472_v27 = vadd.f32 %v1471_v25, %v1357_v19  ;;  %v1552_v28 = vadd.f32 %v1551_v26, %v1373_v20 }
 0x335   : > { %1615 = vst [vmem:[%s2635_s0 + $0x28] sm:$0xff] %v1477_v23  ;;  %1631 = vst [vmem:[%s2635_s0 + $0xa8] sm:$0xff] %v1557_v24  ;;  %v1383_v23 = vmul.f32 %v2923_v51, %v1340_v11 }
 0x336   : > { %1614 = vst [vmem:[%s2635_s0 + $0x20] sm:$0xff] %v1472_v27  ;;  %1630 = vst [vmem:[%s2635_s0 + $0xa0] sm:$0xff] %v1552_v28  ;;  %v1882_v33 = vpop.f32.mrb[6].mxu0  ;;  %v1906_v3 = vpop.f32.mrb[6].mxu1 }
 0x337   : > { %v1487_v44 = vadd.f32 %v1882_v33, %v1360_v29  ;;  %v1567_v45 = vadd.f32 %v1906_v3, %v1376_v30  ;;  %v1481_v34 = vpop.f32.mrb[7].mxu0  ;;  %v1561_v46 = vpop.f32.mrb[7].mxu1 }
 0x338   : > { %v1482_v47 = vadd.f32 %v1481_v34, %v1359_v31  ;;  %v1562_v48 = vadd.f32 %v1561_v46, %v1375_v32 }
 0x339   : > { %1617 = vst [vmem:[%s2635_s0 + $0x38] sm:$0xff] %v1487_v44  ;;  %1633 = vst [vmem:[%s2635_s0 + $0xb8] sm:$0xff] %v1567_v45 }
 0x33a   : > { %1616 = vst [vmem:[%s2635_s0 + $0x30] sm:$0xff] %v1482_v47  ;;  %1632 = vst [vmem:[%s2635_s0 + $0xb0] sm:$0xff] %v1562_v48  ;;  %v1885_v36 = vpop.f32.mrb[8].mxu0  ;;  %v1909_v57 = vpop.f32.mrb[8].mxu1 }
 0x33b   : > { %v1497_v58 = vadd.f32 %v1885_v36, %v1362_v49  ;;  %v1577_v54 = vadd.f32 %v1909_v57, %v1378_v35  ;;  %v1491_v59 = vpop.f32.mrb[9].mxu0  ;;  %v1571_v60 = vpop.f32.mrb[9].mxu1 }
 0x33c   : > { %v1492_v61 = vadd.f32 %v1491_v59, %v1361_v53  ;;  %v1572_v62 = vadd.f32 %v1571_v60, %v1377_v56 }
 0x33d   : > { %1619 = vst [vmem:[%s2635_s0 + $0x48] sm:$0xff] %v1497_v58  ;;  %1635 = vst [vmem:[%s2635_s0 + $0xc8] sm:$0xff] %v1577_v54 }
 0x33e   : > { %1618 = vst [vmem:[%s2635_s0 + $0x40] sm:$0xff] %v1492_v61  ;;  %1634 = vst [vmem:[%s2635_s0 + $0xc0] sm:$0xff] %v1572_v62  ;;  %v1888_v1 = vpop.f32.mrb[10].mxu0  ;;  %v1912_v2 = vpop.f32.mrb[10].mxu1 }
 0x33f   : > { %v1507_v4 = vadd.f32 %v1888_v1, %v1364_v63  ;;  %v1587_v5 = vadd.f32 %v1912_v2, %v1380_v37  ;;  %v1501_v38 = vpop.f32.mrb[11].mxu0  ;;  %v1581_v6 = vpop.f32.mrb[11].mxu1 }
 0x340   : > { %v1502_v7 = vadd.f32 %v1501_v38, %v1363_v55  ;;  %v1582_v8 = vadd.f32 %v1581_v6, %v1379_v0 }
 0x341   : > { %1621 = vst [vmem:[%s2635_s0 + $0x58] sm:$0xff] %v1507_v4  ;;  %1637 = vst [vmem:[%s2635_s0 + $0xd8] sm:$0xff] %v1587_v5 }
 0x342   : > { %1620 = vst [vmem:[%s2635_s0 + $0x50] sm:$0xff] %v1502_v7  ;;  %1636 = vst [vmem:[%s2635_s0 + $0xd0] sm:$0xff] %v1582_v8  ;;  %v1891_v14 = vpop.f32.mrb[12].mxu0  ;;  %v1915_v40 = vpop.f32.mrb[12].mxu1 }
 0x343   : > { %v1517_v15 = vadd.f32 %v1891_v14, %v1366_v9  ;;  %v1597_v16 = vadd.f32 %v1915_v40, %v1382_v39  ;;  %v1511_v17 = vpop.f32.mrb[13].mxu0  ;;  %v1591_v18 = vpop.f32.mrb[13].mxu1 }
 0x344   : > { %v1512_v19 = vadd.f32 %v1511_v17, %v1365_v12  ;;  %v1592_v20 = vadd.f32 %v1591_v18, %v1381_v13 }
 0x345   : > { %1623 = vst [vmem:[%s2635_s0 + $0x68] sm:$0xff] %v1517_v15  ;;  %1639 = vst [vmem:[%s2635_s0 + $0xe8] sm:$0xff] %v1597_v16 }
 0x346   : > { %1622 = vst [vmem:[%s2635_s0 + $0x60] sm:$0xff] %v1512_v19  ;;  %1638 = vst [vmem:[%s2635_s0 + $0xe0] sm:$0xff] %v1592_v20  ;;  %v1894_v24 = vpop.f32.mrb[14].mxu0  ;;  %v1918_v25 = vpop.f32.mrb[14].mxu1 }
 0x347   : > { %v1527_v42 = vadd.f32 %v1894_v24, %v1368_v41  ;;  %v1607_v26 = vadd.f32 %v1918_v25, %v1384_v21  ;;  %v1521_v27 = vpop.f32.mrb[15].mxu0  ;;  %v1601_v28 = vpop.f32.mrb[15].mxu1 }
 0x348   : > { %v1522_v43 = vadd.f32 %v1521_v27, %v1367_v22  ;;  %v1602_v51 = vadd.f32 %v1601_v28, %v1383_v23 }
 0x349   : > { %1625 = vst [vmem:[%s2635_s0 + $0x78] sm:$0xff] %v1527_v42  ;;  %1641 = vst [vmem:[%s2635_s0 + $0xf8] sm:$0xff] %v1607_v26 }
 0x34a   : > { %1624 = vst [vmem:[%s2635_s0 + $0x70] sm:$0xff] %v1522_v43  ;;  %1640 = vst [vmem:[%s2635_s0 + $0xf0] sm:$0xff] %v1602_v51 }
 0x34b   : > { %2272 = shalt.err (!%p2269_p6)
}
 0x34c   : > { %s2273_s17 = scalar_lea.hbm %s3006_s24, 4096  ;;  %s2277_s19 = scalar_lea.hbm %s3078_s7, 8192 }
 0x34d   : > { %p2274_p8 = scmp.ne.s32.totalorder %s3006_s24, %s2273_s17  ;;  %p2278_p11 = scmp.lt.u32.totalorder %s3006_s24, %s3078_s7 }
 0x34e   : > { %p2279_p10 = scmp.lt.u32.totalorder %s2277_s19, %s2273_s17  ;;  %p2281_p3 = scmp.lt.u32.totalorder %s2273_s17, %s3006_s24 }
 0x34f   : > { %p2275_p1 = pnand %p2274_p8, %p3110_p5 }
 0x350   : > { %p2280_p13 = por %p2279_p10, %p2278_p11 }
 0x351   : > { %p2276_p4 = pneg %p2275_p1 }
 0x352   : > { %p2282_p7 = por %p2281_p3, %p2280_p13 }
 0x354   : > { %p2283_p9 = pnand %p2282_p7, %p2276_p4 }
 0x356   : > { %2286 = shalt.err (!%p2283_p9)
}
 0x357   : > { %s2385_s18 = smov 128   ;;  %s2386_s29 = smov 8  }
 0x358   : > { %2071 = dma.vmem_to_hbm [thread:$0]  (%p3110_p5), %s3008_s1, 4096, %s3006_s24, %s3016_s25, %s2385_s18, %s2385_s18, %s2386_s29  }
 0x359 PF: > { %s3111_s8 = sld [smem:[#allocation18_spill]]  ;;  %s3112_s28 = sld [smem:[#allocation21_spill]] }
 0x35a   : > { %s3113_s5 = sld [smem:[#allocation20_spill]] }
 0x35f   : > { %s1671_s15 = sand.u32 1, %s3111_s8   ;;  %p3114_p12 = scmp.ne.s32.totalorder %s3112_s28, 0 }
 0x360   : > { %p3115_p0 = scmp.ge.s32.totalorder %s3113_s5, 2  ;;  %s1672_s11 = scalar_lea.sflag [#allocation8], %s1671_s15 }
 0x362   : > { %p2084_p2 = pnand %p3115_p0, %p3114_p12 }
 0x364   : > { %2334 = dma.done.wait (!%p2084_p2), %s1672_s11, 4096  }
 0x365   : > { %2336 = vsyncadd (!%p2084_p2), %s1672_s11, 4294963200  ;;  %s34_s17 = sadd.s32 1, %s3113_s5   ;;  %s3116_s30 = sld [smem:[#allocation19_spill]] }
 0x366   : > { %p31_p6 = scmp.ge.s32.totalorder %s34_s17, 4   ;;  %s3117_s11 = sld [smem:[#allocation23_spill]] }
 0x367   : > { %s3118_s22 = sld [smem:[#allocation22_spill]]  ;;  %s3119_s1 = smov %s2343_s10 }
 0x368   : > { %s3121_s12 = smov %s2355_s13  ;;  %s3122_s13 = smov %s2359_s14 }
 0x369   : > { %s3123_s14 = smov %s2562_s23  ;;  %s3124_s15 = smov %s2367_s16 }
 0x36a   :  { %33 = sbr.rel (!%p31_p6) target bundleno = 35 (0x23), region = 105 }
 0x36b   : > { %s3120_s10 = smov %s3116_s30 }
 0x36d   : > { %s3125_s16 = smov %s3118_s22 }
 0x371   :  { %1677 = vsyncpa [#allocation7], 1 }
 0x372   :  { %1679 = vsyncpa [#allocation7 + $0x1], 1 }
 0x373   :  { %1680 = vsyncpa [#allocation10], 1 }
 0x374   :  { %1681 = vsyncpa [#allocation8], 1 }
 0x375   :  { %1683 = vsyncpa [#allocation8 + $0x1], 1 }

</bundles_post_ra>
